<compile_context>
chip_gen: v7x
topology: tpu7x:2x2x1
jax: 0.10.0
libtpu: 0.0.40
codegen_flags: <defaults>
</compile_context>

<pallas_src>
import jax
import jax.numpy as jnp
from jax import lax
from jax.experimental import pallas as pl
from jax.experimental.pallas import tpu as pltpu


def _round_up(v, m):
    return (v + m - 1) // m * m


# ----------------------------- kernel bodies ------------------------------ #

def _squeeze_into_padded_scratch(x_ref, ws_ref, bs_ref, sp_ref):
    """Squeeze 1x1 conv + ReLU; result written into the interior of the
    persistent padded scratch. Returns the (B*H*W, Cs) activation (compute
    dtype) for direct reuse by the 1x1 expand."""
    B, H, W, Cin = x_ref.shape
    Cs = ws_ref.shape[1]

    x2 = x_ref[...].reshape(B * H * W, Cin)
    s = jnp.dot(x2, ws_ref[...], preferred_element_type=jnp.float32) + bs_ref[...]
    s = jnp.maximum(s, 0.0).astype(sp_ref.dtype)          # (B*H*W, Cs)

    # Zero only the 1-pixel halo, every step (cheap thin strips).  Not gated on
    # program_id == 0: with dimension_semantics=("parallel",) a second
    # TensorCore never executes step 0 and would see garbage borders.
    dt = sp_ref.dtype
    sp_ref[:, 0:1, :, :] = jnp.zeros((B, 1, W + 2, Cs), dt)
    sp_ref[:, H + 1:H + 2, :, :] = jnp.zeros((B, 1, W + 2, Cs), dt)
    sp_ref[:, 1:H + 1, 0:1, :] = jnp.zeros((B, H, 1, Cs), dt)
    sp_ref[:, 1:H + 1, W + 1:W + 2, :] = jnp.zeros((B, H, 1, Cs), dt)
    sp_ref[:, 1:H + 1, 1:W + 1, :] = s.reshape(B, H, W, Cs)
    return s


def _gather_patches(sp_ref, B, H, W, Cs):
    """im2col of the padded squeeze activation: 9 shifted taps concatenated
    along the channel axis -> (B*H*W, 9*Cs)."""
    return jnp.concatenate(
        [sp_ref[:, dy:dy + H, dx:dx + W, :] for dy in range(3) for dx in range(3)],
        axis=-1,
    ).reshape(B * H * W, 9 * Cs)


def _fire_kernel_fused(x_ref, ws_ref, bs_ref, we_ref, be_ref, out_ref, sp_ref):
    """Fused expand: one K=9*Cs matmul, centre-tap rows carry the 1x1 weight."""
    B, H, W, _ = x_ref.shape
    Cs = ws_ref.shape[1]
    Cout = we_ref.shape[1]

    _squeeze_into_padded_scratch(x_ref, ws_ref, bs_ref, sp_ref)
    patches = _gather_patches(sp_ref, B, H, W, Cs)

    e = jnp.dot(patches, we_ref[...], preferred_element_type=jnp.float32)
    e = jnp.maximum(e + be_ref[...], 0.0)                  # (B*H*W, Cout) f32
    out_ref[...] = e.reshape(B, H, W, Cout).astype(out_ref.dtype)


def _fire_kernel_split(x_ref, ws_ref, bs_ref, w1_ref, b1_ref, w3_ref, b3_ref,
                       out_ref, sp_ref):
    """Split expand (C1, C3 both multiples of 128): two matmuls into
    lane-aligned column ranges of the output (dense stores, no zero-padded
    MXU columns)."""
    B, H, W, _ = x_ref.shape
    Cs = ws_ref.shape[1]
    C1 = w1_ref.shape[1]
    C3 = w3_ref.shape[1]

    s = _squeeze_into_padded_scratch(x_ref, ws_ref, bs_ref, sp_ref)

    # expand1x1 straight from the squeeze activation (K = Cs).
    e1 = jnp.dot(s, w1_ref[...], preferred_element_type=jnp.float32) + b1_ref[...]
    out_ref[:, :, :, 0:C1] = (
        jnp.maximum(e1, 0.0).reshape(B, H, W, C1).astype(out_ref.dtype))

    # expand3x3 from the im2col patches (K = 9*Cs).
    patches = _gather_patches(sp_ref, B, H, W, Cs)
    e3 = jnp.dot(patches, w3_ref[...], preferred_element_type=jnp.float32) + b3_ref[...]
    out_ref[:, :, :, C1:C1 + C3] = (
        jnp.maximum(e3, 0.0).reshape(B, H, W, C3).astype(out_ref.dtype))


# ------------------------------- wrappers ---------------------------------- #

def fire_forward_nhwc(x_nhwc, torch_params, *, compute_dtype=jnp.bfloat16,
                      out_dtype=jnp.float32, batch_block=None,
                      vmem_budget_bytes=48 << 20):
    """Fire forward, NHWC in / NHWC out (preferred: no layout transposes).

    x_nhwc: (N, H, W, Cin).  Returns (N, H, W, C1 + C3) in out_dtype.
    torch_params: (ws, bs, w1, b1, w3, b3) in PyTorch OIHW layouts.
    compute_dtype: matmul operand dtype (bf16 default; accumulation, bias,
      ReLU and output stay f32 unless out_dtype is narrowed).
    """
    ws_t, bs, w1_t, b1, w3_t, b3 = torch_params
    N, H, W, Cin = x_nhwc.shape
    Cs = ws_t.shape[0]
    C1 = w1_t.shape[0]
    C3 = w3_t.shape[0]
    Cout = C1 + C3

    cb = jnp.dtype(compute_dtype).itemsize
    ob = jnp.dtype(out_dtype).itemsize

    # ---- batch block size from a VMEM budget (lane-padded rough estimate) ----
    def lanes(c):
        return _round_up(max(c, 1), 128)

    per_elem = (2 * H * W * lanes(Cin) * cb            # x double buffer
                + 2 * H * W * lanes(Cout) * ob         # out double buffer
                + (H + 2) * (W + 2) * lanes(Cs) * cb   # padded squeeze scratch
                + H * W * lanes(9 * Cs) * cb           # im2col patches
                + H * W * lanes(Cout) * 4)             # f32 accumulator
    if batch_block is None:
        B = max(1, int(vmem_budget_bytes * 0.75) // max(per_elem, 1))
        B = min(B, N)
        if N >= 2:
            B = min(B, -(-N // 2))   # keep >= 2 grid steps (v7x has 2 TCs)
    else:
        B = max(1, min(batch_block, N))

    n_blocks = -(-N // B)
    Npad = n_blocks * B
    if Npad != N:
        x_nhwc = jnp.pad(x_nhwc, ((0, Npad - N), (0, 0), (0, 0), (0, 0)))

    x_k = x_nhwc.astype(compute_dtype)

    # ---- host-side weight layout prep (done once, outside the kernel) ----
    ws = jnp.transpose(ws_t[:, :, 0, 0], (1, 0)).astype(compute_dtype)   # (Cin, Cs)
    bs_k = bs.reshape(1, Cs).astype(jnp.float32)
    w1 = jnp.transpose(w1_t[:, :, 0, 0], (1, 0))                         # (Cs, C1) f32
    # (3,3,Cs,C3) with [dy,dx,i,o] = torch[o,i,dy,dx]  ->  (9*Cs, C3)
    w3 = jnp.transpose(w3_t, (2, 3, 1, 0)).reshape(9 * Cs, C3)           # f32

    split = (C1 % 128 == 0) and (C3 % 128 == 0)

    if split:
        kernel = _fire_kernel_split
        inputs = (x_k, ws, bs_k,
                  w1.astype(compute_dtype), b1.reshape(1, C1).astype(jnp.float32),
                  w3.astype(compute_dtype), b3.reshape(1, C3).astype(jnp.float32))
        # Grid-invariant weight specs (constant index_map -> stay VMEM resident).
        in_specs = [
            pl.BlockSpec((B, H, W, Cin), lambda n: (n, 0, 0, 0)),
            pl.BlockSpec((Cin, Cs), lambda n: (0, 0)),
            pl.BlockSpec((1, Cs), lambda n: (0, 0)),
            pl.BlockSpec((Cs, C1), lambda n: (0, 0)),
            pl.BlockSpec((1, C1), lambda n: (0, 0)),
            pl.BlockSpec((9 * Cs, C3), lambda n: (0, 0)),
            pl.BlockSpec((1, C3), lambda n: (0, 0)),
        ]
    else:
        # Fused weight: centre tap (dy=1, dx=1) rows carry the 1x1 weight.
        we = jnp.zeros((9 * Cs, Cout), jnp.float32)
        we = we.at[4 * Cs:5 * Cs, :C1].set(w1)
        we = we.at[:, C1:Cout].set(w3)
        be = jnp.zeros((1, Cout), jnp.float32)
        be = be.at[0, :C1].set(b1).at[0, C1:Cout].set(b3)
        kernel = _fire_kernel_fused
        inputs = (x_k, ws, bs_k, we.astype(compute_dtype), be)
        in_specs = [
            pl.BlockSpec((B, H, W, Cin), lambda n: (n, 0, 0, 0)),
            pl.BlockSpec((Cin, Cs), lambda n: (0, 0)),
            pl.BlockSpec((1, Cs), lambda n: (0, 0)),
            pl.BlockSpec((9 * Cs, Cout), lambda n: (0, 0)),
            pl.BlockSpec((1, Cout), lambda n: (0, 0)),
        ]

    out = pl.pallas_call(
        kernel,
        out_shape=jax.ShapeDtypeStruct((Npad, H, W, Cout), out_dtype),
        grid_spec=pltpu.PrefetchScalarGridSpec(
            num_scalar_prefetch=0,
            grid=(n_blocks,),
            in_specs=in_specs,
            out_specs=pl.BlockSpec((B, H, W, Cout), lambda n: (n, 0, 0, 0)),
            scratch_shapes=[pltpu.VMEM((B, H + 2, W + 2, Cs), compute_dtype)],
        ),
        compiler_params=pltpu.CompilerParams(
            dimension_semantics=("parallel",),
            vmem_limit_bytes=int(vmem_budget_bytes)),
    )(*inputs)

    return out[:N] if Npad != N else out


def fire_forward(x_nchw, torch_params, **kwargs):
    """PyTorch-compatible NCHW wrapper around the NHWC kernel.  Prefer
    `fire_forward_nhwc` to avoid the two layout-transpose HBM passes."""
    x_nhwc = jnp.transpose(x_nchw, (0, 2, 3, 1))
    out_nhwc = fire_forward_nhwc(x_nhwc, torch_params, **kwargs)
    return jnp.transpose(out_nhwc, (0, 3, 1, 2))


# ----------------------------- params / reference -------------------------- #

def init_fire_params(key, in_dim, squeeze_dim, expand1x1_dim, expand3x3_dim):
    """Deterministic parameter init in PyTorch layouts (OIHW + bias vectors)."""
    k = jax.random.split(key, 6)
    ws = jax.random.normal(k[0], (squeeze_dim, in_dim, 1, 1), jnp.float32) * 0.1
    bs = jax.random.normal(k[1], (squeeze_dim,), jnp.float32) * 0.1
    w1 = jax.random.normal(k[2], (expand1x1_dim, squeeze_dim, 1, 1), jnp.float32) * 0.1
    b1 = jax.random.normal(k[3], (expand1x1_dim,), jnp.float32) * 0.1
    w3 = jax.random.normal(k[4], (expand3x3_dim, squeeze_dim, 3, 3), jnp.float32) * 0.1
    b3 = jax.random.normal(k[5], (expand3x3_dim,), jnp.float32) * 0.1
    return (ws, bs, w1, b1, w3, b3)


def fire_reference(x_nchw, torch_params):
    """Plain-JAX reference matching the PyTorch Fire forward (NCHW, OIHW)."""
    ws, bs, w1, b1, w3, b3 = torch_params
    dn = ('NCHW', 'OIHW', 'NCHW')
    s = lax.conv_general_dilated(x_nchw, ws, (1, 1), 'VALID', dimension_numbers=dn)
    s = jnp.maximum(s + bs[None, :, None, None], 0.0)
    e1 = lax.conv_general_dilated(s, w1, (1, 1), 'VALID', dimension_numbers=dn)
    e1 = jnp.maximum(e1 + b1[None, :, None, None], 0.0)
    e3 = lax.conv_general_dilated(s, w3, (1, 1), ((1, 1), (1, 1)), dimension_numbers=dn)
    e3 = jnp.maximum(e3 + b3[None, :, None, None], 0.0)
    return jnp.concatenate([e1, e3], axis=1)


# ---------------------------------- demo ----------------------------------- #

if __name__ == "__main__":
    key = jax.random.PRNGKey(0)
    kx, kp, kp2 = jax.random.split(key, 3)

    # --- test 1: small shape, fused-expand path (C1/C3 not lane aligned) ---
    N, Cin, H, W = 2, 4, 16, 16
    Cs, C1, C3 = 6, 8, 8
    x = jax.random.normal(kx, (N, Cin, H, W), jnp.float32)
    params = init_fire_params(kp, Cin, Cs, C1, C3)
    ref = fire_reference(x, params)

    # f32 operand path (exact against the f32 reference)
    out_f32 = jax.block_until_ready(
        fire_forward(x, params, compute_dtype=jnp.float32))
    assert out_f32.shape == (N, C1 + C3, H, W), out_f32.shape
    assert jnp.allclose(out_f32, ref, atol=1e-4, rtol=1e-4), "f32 kernel mismatch"

    # default path: bf16 matmul operands, f32 accumulation / output
    out_bf16 = jax.block_until_ready(fire_forward(x, params))
    assert jnp.allclose(out_bf16, ref, atol=5e-2, rtol=5e-2), "bf16 kernel mismatch"

    # NHWC fast path (no wrapper transposes)
    x_nhwc = jnp.transpose(x, (0, 2, 3, 1))
    out_nhwc = jax.block_until_ready(
        fire_forward_nhwc(x_nhwc, params, compute_dtype=jnp.float32))
    assert jnp.allclose(jnp.transpose(out_nhwc, (0, 3, 1, 2)), ref,
                        atol=1e-4, rtol=1e-4), "NHWC path mismatch"

    # --- test 2: lane-aligned expand widths -> split-matmul path (fire4/5-like) ---
    N2, Cin2, H2, W2 = 2, 8, 8, 8
    Cs2, C12, C32 = 8, 128, 128
    x2 = jax.random.normal(jax.random.fold_in(kx, 1), (N2, Cin2, H2, W2), jnp.float32)
    params2 = init_fire_params(kp2, Cin2, Cs2, C12, C32)
    ref2 = fire_reference(x2, params2)
    out2 = jax.block_until_ready(
        fire_forward(x2, params2, compute_dtype=jnp.float32))
    assert out2.shape == (N2, C12 + C32, H2, W2), out2.shape
    assert jnp.allclose(out2, ref2, atol=1e-3, rtol=1e-3), "split-path mismatch"

    print("KERNEL_OK")
</pallas_src>

<mosaic_0001>
module attributes {stable_mosaic.version = 11 : i64} {
  func.func @_fire_kernel_fused(%arg0: i32, %arg1: memref<1x16x16x4xf32, #tpu.memory_space<vmem>>, %arg2: memref<4x6xf32, #tpu.memory_space<vmem>>, %arg3: memref<1x6xf32, #tpu.memory_space<vmem>>, %arg4: memref<54x16xf32, #tpu.memory_space<vmem>>, %arg5: memref<1x16xf32, #tpu.memory_space<vmem>>, %arg6: memref<1x16x16x16xf32, #tpu.memory_space<vmem>>, %arg7: memref<1x18x18x6xf32, #tpu.memory_space<vmem>>) attributes {dimension_semantics = [#tpu.dimension_semantics<parallel>], iteration_bounds = array<i64: 2>, scalar_prefetch = 0 : i64, scratch_operands = 1 : i64, tpu.core_type = #tpu.core_type<tc>, window_params = [{transform_indices = @transform_0, window_bounds = array<i64: 1, 16, 16, 4>}, {pipeline_mode = #tpu.pipeline_mode<synchronous>, transform_indices = @transform_1, window_bounds = array<i64: 4, 6>}, {pipeline_mode = #tpu.pipeline_mode<synchronous>, transform_indices = @transform_2, window_bounds = array<i64: 1, 6>}, {pipeline_mode = #tpu.pipeline_mode<synchronous>, transform_indices = @transform_3, window_bounds = array<i64: 54, 16>}, {pipeline_mode = #tpu.pipeline_mode<synchronous>, transform_indices = @transform_4, window_bounds = array<i64: 1, 16>}, {transform_indices = @transform_5, window_bounds = array<i64: 1, 16, 16, 16>}]} {
    %c0 = arith.constant 0 : index
    %c0_0 = arith.constant 0 : index
    %c0_1 = arith.constant 0 : index
    %c0_2 = arith.constant 0 : index
    %0 = vector.load %arg1[%c0, %c0_0, %c0_1, %c0_2] : memref<1x16x16x4xf32, #tpu.memory_space<vmem>>, vector<1x16x16x4xf32>
    %1 = vector.shape_cast %0 : vector<1x16x16x4xf32> to vector<256x4xf32>
    %c0_3 = arith.constant 0 : index
    %c0_4 = arith.constant 0 : index
    %2 = vector.load %arg2[%c0_3, %c0_4] : memref<4x6xf32, #tpu.memory_space<vmem>>, vector<4x6xf32>
    %cst = arith.constant dense<0.000000e+00> : vector<256x6xf32>
    %3 = tpu.matmul %1, %2, %cst {dimension_numbers = #tpu.dot_dimension_numbers<[1], [0], [0], [1], [0, 0, 1, 1], [], []>} : vector<256x4xf32>, vector<4x6xf32>, vector<256x6xf32> -> vector<256x6xf32>
    %c0_5 = arith.constant 0 : index
    %c0_6 = arith.constant 0 : index
    %4 = vector.load %arg3[%c0_5, %c0_6] : memref<1x6xf32, #tpu.memory_space<vmem>>, vector<1x6xf32>
    %5 = vector.broadcast %4 : vector<1x6xf32> to vector<256x6xf32>
    %6 = arith.addf %3, %5 : vector<256x6xf32>
    %cst_7 = arith.constant 0.000000e+00 : f32
    %7 = vector.broadcast %cst_7 : f32 to vector<256x6xf32>
    %8 = arith.maximumf %6, %7 : vector<256x6xf32>
    %cst_8 = arith.constant 0.000000e+00 : f32
    %9 = vector.broadcast %cst_8 : f32 to vector<1x1x18x6xf32>
    %c0_9 = arith.constant 0 : index
    %c0_10 = arith.constant 0 : index
    %c0_11 = arith.constant 0 : index
    %c0_12 = arith.constant 0 : index
    %10 = vector.load %arg7[%c0_9, %c0_10, %c0_11, %c0_12] : memref<1x18x18x6xf32, #tpu.memory_space<vmem>>, vector<1x1x18x6xf32>
    tpu.vector_store %arg7[%c0_9, %c0_10, %c0_11, %c0_12], %9 {strides = array<i32>} : memref<1x18x18x6xf32, #tpu.memory_space<vmem>>, vector<1x1x18x6xf32>,
    %cst_13 = arith.constant 0.000000e+00 : f32
    %11 = vector.broadcast %cst_13 : f32 to vector<1x1x18x6xf32>
    %c0_14 = arith.constant 0 : index
    %c17 = arith.constant 17 : index
    %c0_15 = arith.constant 0 : index
    %c0_16 = arith.constant 0 : index
    %12 = vector.load %arg7[%c0_14, %c17, %c0_15, %c0_16] : memref<1x18x18x6xf32, #tpu.memory_space<vmem>>, vector<1x1x18x6xf32>
    tpu.vector_store %arg7[%c0_14, %c17, %c0_15, %c0_16], %11 {strides = array<i32>} : memref<1x18x18x6xf32, #tpu.memory_space<vmem>>, vector<1x1x18x6xf32>,
    %cst_17 = arith.constant 0.000000e+00 : f32
    %13 = vector.broadcast %cst_17 : f32 to vector<1x16x1x6xf32>
    %c0_18 = arith.constant 0 : index
    %c1 = arith.constant 1 : index
    %c0_19 = arith.constant 0 : index
    %c0_20 = arith.constant 0 : index
    %14 = vector.load %arg7[%c0_18, %c1, %c0_19, %c0_20] : memref<1x18x18x6xf32, #tpu.memory_space<vmem>>, vector<1x16x1x6xf32>
    tpu.vector_store %arg7[%c0_18, %c1, %c0_19, %c0_20], %13 {strides = array<i32>} : memref<1x18x18x6xf32, #tpu.memory_space<vmem>>, vector<1x16x1x6xf32>,
    %cst_21 = arith.constant 0.000000e+00 : f32
    %15 = vector.broadcast %cst_21 : f32 to vector<1x16x1x6xf32>
    %c0_22 = arith.constant 0 : index
    %c1_23 = arith.constant 1 : index
    %c17_24 = arith.constant 17 : index
    %c0_25 = arith.constant 0 : index
    %16 = vector.load %arg7[%c0_22, %c1_23, %c17_24, %c0_25] : memref<1x18x18x6xf32, #tpu.memory_space<vmem>>, vector<1x16x1x6xf32>
    tpu.vector_store %arg7[%c0_22, %c1_23, %c17_24, %c0_25], %15 {strides = array<i32>} : memref<1x18x18x6xf32, #tpu.memory_space<vmem>>, vector<1x16x1x6xf32>,
    %17 = vector.shape_cast %8 : vector<256x6xf32> to vector<1x16x16x6xf32>
    %c0_26 = arith.constant 0 : index
    %c1_27 = arith.constant 1 : index
    %c1_28 = arith.constant 1 : index
    %c0_29 = arith.constant 0 : index
    %18 = vector.load %arg7[%c0_26, %c1_27, %c1_28, %c0_29] : memref<1x18x18x6xf32, #tpu.memory_space<vmem>>, vector<1x16x16x6xf32>
    tpu.vector_store %arg7[%c0_26, %c1_27, %c1_28, %c0_29], %17 {strides = array<i32>} : memref<1x18x18x6xf32, #tpu.memory_space<vmem>>, vector<1x16x16x6xf32>,
    %c0_30 = arith.constant 0 : index
    %c0_31 = arith.constant 0 : index
    %c0_32 = arith.constant 0 : index
    %c0_33 = arith.constant 0 : index
    %19 = vector.load %arg7[%c0_30, %c0_31, %c0_32, %c0_33] : memref<1x18x18x6xf32, #tpu.memory_space<vmem>>, vector<1x16x16x6xf32>
    %c0_34 = arith.constant 0 : index
    %c0_35 = arith.constant 0 : index
    %c1_36 = arith.constant 1 : index
    %c0_37 = arith.constant 0 : index
    %20 = vector.load %arg7[%c0_34, %c0_35, %c1_36, %c0_37] : memref<1x18x18x6xf32, #tpu.memory_space<vmem>>, vector<1x16x16x6xf32>
    %c0_38 = arith.constant 0 : index
    %c0_39 = arith.constant 0 : index
    %c2 = arith.constant 2 : index
    %c0_40 = arith.constant 0 : index
    %21 = vector.load %arg7[%c0_38, %c0_39, %c2, %c0_40] : memref<1x18x18x6xf32, #tpu.memory_space<vmem>>, vector<1x16x16x6xf32>
    %c0_41 = arith.constant 0 : index
    %c1_42 = arith.constant 1 : index
    %c0_43 = arith.constant 0 : index
    %c0_44 = arith.constant 0 : index
    %22 = vector.load %arg7[%c0_41, %c1_42, %c0_43, %c0_44] : memref<1x18x18x6xf32, #tpu.memory_space<vmem>>, vector<1x16x16x6xf32>
    %c0_45 = arith.constant 0 : index
    %c1_46 = arith.constant 1 : index
    %c1_47 = arith.constant 1 : index
    %c0_48 = arith.constant 0 : index
    %23 = vector.load %arg7[%c0_45, %c1_46, %c1_47, %c0_48] : memref<1x18x18x6xf32, #tpu.memory_space<vmem>>, vector<1x16x16x6xf32>
    %c0_49 = arith.constant 0 : index
    %c1_50 = arith.constant 1 : index
    %c2_51 = arith.constant 2 : index
    %c0_52 = arith.constant 0 : index
    %24 = vector.load %arg7[%c0_49, %c1_50, %c2_51, %c0_52] : memref<1x18x18x6xf32, #tpu.memory_space<vmem>>, vector<1x16x16x6xf32>
    %c0_53 = arith.constant 0 : index
    %c2_54 = arith.constant 2 : index
    %c0_55 = arith.constant 0 : index
    %c0_56 = arith.constant 0 : index
    %25 = vector.load %arg7[%c0_53, %c2_54, %c0_55, %c0_56] : memref<1x18x18x6xf32, #tpu.memory_space<vmem>>, vector<1x16x16x6xf32>
    %c0_57 = arith.constant 0 : index
    %c2_58 = arith.constant 2 : index
    %c1_59 = arith.constant 1 : index
    %c0_60 = arith.constant 0 : index
    %26 = vector.load %arg7[%c0_57, %c2_58, %c1_59, %c0_60] : memref<1x18x18x6xf32, #tpu.memory_space<vmem>>, vector<1x16x16x6xf32>
    %c0_61 = arith.constant 0 : index
    %c2_62 = arith.constant 2 : index
    %c2_63 = arith.constant 2 : index
    %c0_64 = arith.constant 0 : index
    %27 = vector.load %arg7[%c0_61, %c2_62, %c2_63, %c0_64] : memref<1x18x18x6xf32, #tpu.memory_space<vmem>>, vector<1x16x16x6xf32>
    %28 = tpu.concatenate %19, %20, %21, %22, %23, %24, %25, %26, %27 in 3 : vector<1x16x16x6xf32>, vector<1x16x16x6xf32>, vector<1x16x16x6xf32>, vector<1x16x16x6xf32>, vector<1x16x16x6xf32>, vector<1x16x16x6xf32>, vector<1x16x16x6xf32>, vector<1x16x16x6xf32>, vector<1x16x16x6xf32> -> vector<1x16x16x54xf32>
    %29 = vector.shape_cast %28 : vector<1x16x16x54xf32> to vector<256x54xf32>
    %c0_65 = arith.constant 0 : index
    %c0_66 = arith.constant 0 : index
    %30 = vector.load %arg4[%c0_65, %c0_66] : memref<54x16xf32, #tpu.memory_space<vmem>>, vector<54x16xf32>
    %cst_67 = arith.constant dense<0.000000e+00> : vector<256x16xf32>
    %31 = tpu.matmul %29, %30, %cst_67 {dimension_numbers = #tpu.dot_dimension_numbers<[1], [0], [0], [1], [0, 0, 1, 1], [], []>} : vector<256x54xf32>, vector<54x16xf32>, vector<256x16xf32> -> vector<256x16xf32>
    %c0_68 = arith.constant 0 : index
    %c0_69 = arith.constant 0 : index
    %32 = vector.load %arg5[%c0_68, %c0_69] : memref<1x16xf32, #tpu.memory_space<vmem>>, vector<1x16xf32>
    %33 = vector.broadcast %32 : vector<1x16xf32> to vector<256x16xf32>
    %34 = arith.addf %31, %33 : vector<256x16xf32>
    %cst_70 = arith.constant 0.000000e+00 : f32
    %35 = vector.broadcast %cst_70 : f32 to vector<256x16xf32>
    %36 = arith.maximumf %34, %35 : vector<256x16xf32>
    %37 = vector.shape_cast %36 : vector<256x16xf32> to vector<1x16x16x16xf32>
    %c0_71 = arith.constant 0 : index
    %c0_72 = arith.constant 0 : index
    %c0_73 = arith.constant 0 : index
    %c0_74 = arith.constant 0 : index
    %38 = vector.load %arg6[%c0_71, %c0_72, %c0_73, %c0_74] : memref<1x16x16x16xf32, #tpu.memory_space<vmem>>, vector<1x16x16x16xf32>
    tpu.vector_store %arg6[%c0_71, %c0_72, %c0_73, %c0_74], %37 {strides = array<i32>} : memref<1x16x16x16xf32, #tpu.memory_space<vmem>>, vector<1x16x16x16xf32>,
    return
  }
  func.func @transform_0(%arg0: i32) -> (i32, i32, i32, i32) {
    %c0_i32 = arith.constant 0 : i32
    %c0_i32_0 = arith.constant 0 : i32
    %c0_i32_1 = arith.constant 0 : i32
    %c0_i32_2 = arith.constant 0 : i32
    return %arg0, %c0_i32, %c0_i32_0, %c0_i32_1 : i32, i32, i32, i32
  }
  func.func @transform_1(%arg0: i32) -> (i32, i32) {
    %c0_i32 = arith.constant 0 : i32
    %c0_i32_0 = arith.constant 0 : i32
    %c0_i32_1 = arith.constant 0 : i32
    return %c0_i32, %c0_i32_0 : i32, i32
  }
  func.func @transform_2(%arg0: i32) -> (i32, i32) {
    %c0_i32 = arith.constant 0 : i32
    %c0_i32_0 = arith.constant 0 : i32
    %c0_i32_1 = arith.constant 0 : i32
    return %c0_i32, %c0_i32_0 : i32, i32
  }
  func.func @transform_3(%arg0: i32) -> (i32, i32) {
    %c0_i32 = arith.constant 0 : i32
    %c0_i32_0 = arith.constant 0 : i32
    %c0_i32_1 = arith.constant 0 : i32
    return %c0_i32, %c0_i32_0 : i32, i32
  }
  func.func @transform_4(%arg0: i32) -> (i32, i32) {
    %c0_i32 = arith.constant 0 : i32
    %c0_i32_0 = arith.constant 0 : i32
    %c0_i32_1 = arith.constant 0 : i32
    return %c0_i32, %c0_i32_0 : i32, i32
  }
  func.func @transform_5(%arg0: i32) -> (i32, i32, i32, i32) {
    %c0_i32 = arith.constant 0 : i32
    %c0_i32_0 = arith.constant 0 : i32
    %c0_i32_1 = arith.constant 0 : i32
    %c0_i32_2 = arith.constant 0 : i32
    return %arg0, %c0_i32, %c0_i32_0, %c0_i32_1 : i32, i32, i32, i32
  }
}

</mosaic_0001>

<bundles_post_ra>
// kernel: tpu_custom_call.1
= control target key start
LH: loop header
LB: loop body
LE: loop exit
PB: predicated region body
PF: predicated region fallthrough
CT: control target
= control target key end

     0   :  { %10 = vsyncpa [#allocation4], 0  ;;  %s4791_s0 = inlined_call_operand.vmem [shape: f32[2,16,16,4], index: 0, kind: input, shape index: {}]   ;;  %s4792_s1 = inlined_call_operand.vmem [shape: f32[4,6], index: 1, kind: input, shape index: {}]   ;;  %s4793_s2 = inlined_call_operand.vmem [shape: f32[1,6], index: 2, kind: input, shape index: {}]   ;;  %s4794_s3 = inlined_call_operand.vmem [shape: f32[54,16], index: 3, kind: input, shape index: {}]   ;;  %s4795_s4 = inlined_call_operand.vmem [shape: f32[1,16], index: 4, kind: input, shape index: {}]   ;;  %s4796_s5 = inlined_call_operand.hbm [shape: f32[2,16,16,16], index: 5, kind: output, shape index: {}]  }
   0x1   :  { %12 = vsyncpa [#allocation4 + $0x1], 0  ;;  %s3197_s18 = smov 0   ;;  %s3199_s19 = smov 0  }
   0x2   :  { %s3201_s20 = smov 0   ;;  %s3203_s21 = smov 0  }
   0x3 LB: > { %s3218_s22 = sadd.s32 4294967295, %s3153_s21   ;;  %s2753_s23 = sadd.s32 4294967294, %s3153_s21   ;;  %s3153_s21 = sphi %s3203_s21, %s4894_s21   ;;  %s3149_s20 = sphi %s3201_s20, %s4893_s20   ;;  %s3145_s19 = sphi %s3199_s19, %s4892_s19   ;;  %s3141_s18 = sphi %s3197_s18, %s4891_s18  }
   0x4   : > { %s3222_s24 = sadd.s32 1, %s3153_s21   ;;  %s135_s25 = sadd.s32 1, %s3149_s20 }
   0x5   : > { %s132_s26 = ssub.s32 %s3153_s21, %s3222_s24  ;;  %p145_p0 = scmp.ne.s32.totalorder %s3149_s20, %s3145_s19 }
   0x6   : > { %p133_p1 = scmp.eq.s32.totalorder %s132_s26, 0  ;;  %p146_p2 = scmp.eq.s32.totalorder %s3218_s22, 1 }
   0x7   : > { %p151_p3 = scmp.ne.s32.totalorder %s3145_s19, %s3141_s18  ;;  %p152_p4 = scmp.eq.s32.totalorder %s2753_s23, 1 }
   0x8   : > { %s3233_s27 = scalar_select %p133_p1, %s3149_s20, %s135_s25  }
   0x9   : > { %p3235_p5 = por %p146_p2, %p145_p0  ;;  %p3239_p6 = por %p152_p4, %p151_p3 }
   0xa   : > { %p2756_p7 = scmp.ge.s32.totalorder %s3153_s21, 1  ;;  %p190_p8 = scmp.lt.s32.totalorder %s3153_s21, 3 }
   0xc   : > { %p191_p9 = pnand %p2756_p7, %p190_p8 }
   0xe   : > { %194 = sbr.rel (%p191_p9) target bundleno = 1105 (0x451), region = 40 }
  0x15   : > { %v255_v0 = vld [vmem:[%s4792_s1] sm:$0xf]  ;;  %vm360_vm0 = vcmask 1043456   ;;  %p218_p10 = scmp.lt.s32.totalorder %s3218_s22, 1  ;;  %vm263_vm1 = vcmask 31744   ;;  %vm621_vm2 = vcmask 48128  }
  0x16   : > { %2907 = vmatprep.subr.msk.mxu0 %vm360_vm0, %v255_v0  ;;  %v3155_v19 = vmov 0.0   ;;  %vm624_vm3 = vcmask 41984   ;;  %s3156_s12 = smov 6   ;;  %vm631_vm4 = vcmask 40960   ;;  %s3157_s13 = smov 12   ;;  %vm2383_vm5 = vcmask 1045504  }
  0x17   : > { %2908 = vmatpush3.msk.msra.mxu0 %vm360_vm0, %v255_v0  ;;  %s219_s7 = scalar_select %p218_p10, %s3218_s22, 1  ;;  %622 = vst.msk [vmem:[#allocation2] sm:$0xff] %vm621_vm2, %v3155_v19  ;;  %623 = vst.msk [vmem:[#allocation2 + $0x8] sm:$0xff] %vm621_vm2, %v3155_v19  ;;  %v3358_v36 = vld [vmem:[%s4793_s2] ss:$0 sm:$0xff]  ;;  %vm2041_vm6 = vcmask 97280  }
  0x18   : > { %627 = vst.msk [vmem:[#allocation2 + $0x198] sm:$0xff] %vm621_vm2, %v3155_v19  ;;  %628 = vst.msk [vmem:[#allocation2 + $0x1a0] sm:$0xff] %vm621_vm2, %v3155_v19  ;;  %s3158_s16 = smov 18   ;;  %s3159_s17 = smov 24   ;;  %vm2074_vm7 = vcmask 146432   ;;  %vm2107_vm8 = vcmask 195584  }
  0x19   : > { %s2833_s8 = sshll.u32 %s219_s7, 8  ;;  %625 = vst.msk [vmem:[#allocation2 + $0x10] sm:$0x3] %vm624_vm3, %v3155_v19  ;;  %629 = vst.msk [vmem:[#allocation2 + $0x1a8] sm:$0x3] %vm624_vm3, %v3155_v19  ;;  %s3160_s23 = smov 30  }
  0x1a   : > { %s3253_s11 = scalar_lea.vmem %s4791_s0, %s2833_s8  ;;  %648 = vst.msk [vmem:[#allocation2 + $0x29] sm:$0x1] %vm631_vm4, %v3155_v19  ;;  %632 = vst.msk [vmem:[#allocation2 + $0x18] sm:$0x1] %vm631_vm4, %v3155_v19  ;;  %s3161_s14 = smov 42   ;;  %vm2140_vm9 = vcmask 244736  }
  0x1b   : > { %v223_v1 = vld [vmem:[%s3253_s11] sm:$0xff]  ;;  %v224_v2 = vld [vmem:[%s3253_s11 + $0x8] sm:$0xff]  ;;  %v225_v3 = vld [vmem:[%s3253_s11 + $0x10] sm:$0xff]  ;;  %633 = vst.msk [vmem:[#allocation2 + $0x30] sm:$0x1] %vm631_vm4, %v3155_v19  ;;  %s3162_s15 = smov 36  }
  0x1c   : > { %2909 = vmatprep.mubr.msk.f32.mxu0 %vm263_vm1, %v223_v1  ;;  %v226_v4 = vld [vmem:[%s3253_s11 + $0x18] sm:$0xff]  ;;  %v227_v5 = vld [vmem:[%s3253_s11 + $0x20] sm:$0xff]  ;;  %v228_v6 = vld [vmem:[%s3253_s11 + $0x28] sm:$0xff]  ;;  %634 = vst.msk [vmem:[#allocation2 + $0x48] sm:$0x1] %vm631_vm4, %v3155_v19  ;;  %s3163_s7 = smov 48  }
  0x1d   : > { %2910 = vmatmul.mubr.msk.f32.vlgmr.msra.gmra.mrb[0].mxu0 %vm263_vm1, %v224_v2  ;;  %v229_v7 = vld [vmem:[%s3253_s11 + $0x30] sm:$0xff]  ;;  %v230_v8 = vld [vmem:[%s3253_s11 + $0x38] sm:$0xff]  ;;  %v231_v9 = vld [vmem:[%s3253_s11 + $0x40] sm:$0xff]  ;;  %635 = vst.msk [vmem:[#allocation2 + $0x60] sm:$0x1] %vm631_vm4, %v3155_v19  ;;  %vm2173_vm10 = vcmask 293888  }
  0x1e   : > { %2912 = vmatprep.mubr.msk.f32.mxu0 %vm263_vm1, %v225_v3  ;;  %v232_v10 = vld [vmem:[%s3253_s11 + $0x48] sm:$0xff]  ;;  %v233_v11 = vld [vmem:[%s3253_s11 + $0x50] sm:$0xff]  ;;  %v234_v12 = vld [vmem:[%s3253_s11 + $0x58] sm:$0xff]  ;;  %636 = vst.msk [vmem:[#allocation2 + $0x78] sm:$0x1] %vm631_vm4, %v3155_v19  ;;  %vm2206_vm11 = vcmask 343040  }
  0x1f   : > { %v235_v13 = vld [vmem:[%s3253_s11 + $0x60] sm:$0xff]  ;;  %v236_v14 = vld [vmem:[%s3253_s11 + $0x68] sm:$0xff]  ;;  %v237_v15 = vld [vmem:[%s3253_s11 + $0x70] sm:$0xff]  ;;  %637 = vst.msk [vmem:[#allocation2 + $0x90] sm:$0x1] %vm631_vm4, %v3155_v19  ;;  %vm2239_vm12 = vcmask 392192  }
  0x20   : > { %v238_v16 = vld [vmem:[%s3253_s11 + $0x78] sm:$0xff]  ;;  %v239_v17 = vld [vmem:[%s3253_s11 + $0x80] sm:$0xff]  ;;  %v240_v18 = vld [vmem:[%s3253_s11 + $0x88] sm:$0xff]  ;;  %638 = vst.msk [vmem:[#allocation2 + $0xa8] sm:$0x1] %vm631_vm4, %v3155_v19  ;;  %vm2286_vm13 = vcmask 441344  }
  0x21   : > { %2913 = vmatmul.mubr.msk.f32.gmra.mrb[2].mxu0 %vm263_vm1, %v226_v4  ;;  %v728_v20 = vld [vmem:[#allocation2 + $0x1] sm:$0xff]  ;;  %v729_v21 = vld [vmem:[#allocation2 + $0x9] sm:$0xff]  ;;  %639 = vst.msk [vmem:[#allocation2 + $0xc0] sm:$0x1] %vm631_vm4, %v3155_v19  ;;  %640 = vst.msk [vmem:[#allocation2 + $0xd8] sm:$0x1] %vm631_vm4, %v3155_v19 }
  0x22   : > { %2915 = vmatprep.mubr.msk.f32.mxu0 %vm263_vm1, %v227_v5  ;;  %1017 = vrot.lane.b32.xlu0 %v728_v20, %s3156_s12  ;;  %641 = vst.msk [vmem:[#allocation2 + $0xf0] sm:$0x1] %vm631_vm4, %v3155_v19  ;;  %642 = vst.msk [vmem:[#allocation2 + $0x108] sm:$0x1] %vm631_vm4, %v3155_v19  ;;  %v241_v22 = vld [vmem:[%s3253_s11 + $0x90] sm:$0xff]  ;;  %v242_v24 = vld [vmem:[%s3253_s11 + $0x98] sm:$0xff] }
  0x23   : > { %643 = vst.msk [vmem:[#allocation2 + $0x120] sm:$0x1] %vm631_vm4, %v3155_v19  ;;  %644 = vst.msk [vmem:[#allocation2 + $0x138] sm:$0x1] %vm631_vm4, %v3155_v19  ;;  %v761_v23 = vld [vmem:[#allocation2 + $0xa] sm:$0xff]  ;;  %v760_v25 = vld [vmem:[#allocation2 + $0x2] sm:$0xff] }
  0x24   : > { %645 = vst.msk [vmem:[#allocation2 + $0x150] sm:$0x1] %vm631_vm4, %v3155_v19  ;;  %646 = vst.msk [vmem:[#allocation2 + $0x168] sm:$0x1] %vm631_vm4, %v3155_v19  ;;  %1147 = vrot.lane.b32.xlu1 %v761_v23, %s3157_s13  ;;  %v243_v26 = vld [vmem:[%s3253_s11 + $0xa0] sm:$0xff]  ;;  %v244_v27 = vld [vmem:[%s3253_s11 + $0xa8] sm:$0xff] }
  0x25   : > { %2916 = vmatmul.mubr.msk.f32.gmra.mrb[4].mxu0 %vm263_vm1, %v228_v6  ;;  %647 = vst.msk [vmem:[#allocation2 + $0x180] sm:$0x1] %vm631_vm4, %v3155_v19  ;;  %649 = vst.msk [vmem:[#allocation2 + $0x41] sm:$0x1] %vm631_vm4, %v3155_v19  ;;  %v245_v28 = vld [vmem:[%s3253_s11 + $0xb0] sm:$0xff]  ;;  %v246_v29 = vld [vmem:[%s3253_s11 + $0xb8] sm:$0xff] }
  0x26   : > { %2918 = vmatprep.mubr.msk.f32.mxu0 %vm263_vm1, %v229_v7  ;;  %650 = vst.msk [vmem:[#allocation2 + $0x59] sm:$0x1] %vm631_vm4, %v3155_v19  ;;  %651 = vst.msk [vmem:[#allocation2 + $0x71] sm:$0x1] %vm631_vm4, %v3155_v19  ;;  %1019 = vrot.lane.b32.xlu0 %v729_v21, %s3156_s12  ;;  %v247_v30 = vld [vmem:[%s3253_s11 + $0xc0] sm:$0xff]  ;;  %v248_v31 = vld [vmem:[%s3253_s11 + $0xc8] sm:$0xff] }
  0x27   : > { %652 = vst.msk [vmem:[#allocation2 + $0x89] sm:$0x1] %vm631_vm4, %v3155_v19  ;;  %653 = vst.msk [vmem:[#allocation2 + $0xa1] sm:$0x1] %vm631_vm4, %v3155_v19  ;;  %v249_v32 = vld [vmem:[%s3253_s11 + $0xd0] sm:$0xff]  ;;  %v250_v33 = vld [vmem:[%s3253_s11 + $0xd8] sm:$0xff] }
  0x28   : > { %654 = vst.msk [vmem:[#allocation2 + $0xb9] sm:$0x1] %vm631_vm4, %v3155_v19  ;;  %655 = vst.msk [vmem:[#allocation2 + $0xd1] sm:$0x1] %vm631_vm4, %v3155_v19  ;;  %v251_v34 = vld [vmem:[%s3253_s11 + $0xe0] sm:$0xff]  ;;  %v252_v35 = vld [vmem:[%s3253_s11 + $0xe8] sm:$0xff] }
  0x29   : > { %2919 = vmatmul.mubr.msk.f32.gmra.mrb[6].mxu0 %vm263_vm1, %v230_v8  ;;  %656 = vst.msk [vmem:[#allocation2 + $0xe9] sm:$0x1] %vm631_vm4, %v3155_v19  ;;  %657 = vst.msk [vmem:[#allocation2 + $0x101] sm:$0x1] %vm631_vm4, %v3155_v19  ;;  %vm2644_vm14 = vcmask 130048   ;;  %s3164_s9 = smov [#allocation3]  }
  0x2a   : > { %2921 = vmatprep.mubr.msk.f32.mxu0 %vm263_vm1, %v231_v9  ;;  %658 = vst.msk [vmem:[#allocation2 + $0x119] sm:$0x1] %vm631_vm4, %v3155_v19  ;;  %659 = vst.msk [vmem:[#allocation2 + $0x131] sm:$0x1] %vm631_vm4, %v3155_v19  ;;  %1145 = vrot.lane.b32.xlu0 %v760_v25, %s3157_s13 }
  0x2b   : > { %660 = vst.msk [vmem:[#allocation2 + $0x149] sm:$0x1] %vm631_vm4, %v3155_v19  ;;  %661 = vst.msk [vmem:[#allocation2 + $0x161] sm:$0x1] %vm631_vm4, %v3155_v19 }
  0x2c   : > { %662 = vst.msk [vmem:[#allocation2 + $0x179] sm:$0x1] %vm631_vm4, %v3155_v19  ;;  %663 = vst.msk [vmem:[#allocation2 + $0x191] sm:$0x1] %vm631_vm4, %v3155_v19 }
  0x2d   : > { %2922 = vmatmul.mubr.msk.f32.gmra.mrb[8].mxu0 %vm263_vm1, %v232_v10 }
  0x2e   : > { %2924 = vmatprep.mubr.msk.f32.mxu0 %vm263_vm1, %v233_v11 }
  0x31   : > { %2925 = vmatmul.mubr.msk.f32.gmra.mrb[10].mxu0 %vm263_vm1, %v234_v12 }
  0x32   : > { %2927 = vmatprep.mubr.msk.f32.mxu0 %vm263_vm1, %v235_v13 }
  0x35   : > { %2928 = vmatmul.mubr.msk.f32.gmra.mrb[12].mxu0 %vm263_vm1, %v236_v14 }
  0x36   : > { %2930 = vmatprep.mubr.msk.f32.mxu0 %vm263_vm1, %v237_v15 }
  0x39   : > { %2931 = vmatmul.mubr.msk.f32.gmra.mrb[14].mxu0 %vm263_vm1, %v238_v16 }
  0x3a   : > { %2933 = vmatprep.mubr.msk.f32.mxu0 %vm263_vm1, %v239_v17 }
  0x3d   : > { %2934 = vmatmul.mubr.msk.f32.gmra.mrb[16].mxu0 %vm263_vm1, %v240_v18 }
  0x3e   : > { %2936 = vmatprep.mubr.msk.f32.mxu0 %vm263_vm1, %v241_v22 }
  0x41   : > { %2937 = vmatmul.mubr.msk.f32.gmra.mrb[18].mxu0 %vm263_vm1, %v242_v24 }
  0x42   : > { %2939 = vmatprep.mubr.msk.f32.mxu0 %vm263_vm1, %v243_v26 }
  0x45   : > { %2940 = vmatmul.mubr.msk.f32.gmra.mrb[20].mxu0 %vm263_vm1, %v244_v27 }
  0x46   : > { %2942 = vmatprep.mubr.msk.f32.mxu0 %vm263_vm1, %v245_v28 }
  0x49   : > { %2943 = vmatmul.mubr.msk.f32.gmra.mrb[22].mxu0 %vm263_vm1, %v246_v29 }
  0x4a   : > { %2945 = vmatprep.mubr.msk.f32.mxu0 %vm263_vm1, %v247_v30 }
  0x4d   : > { %2946 = vmatmul.mubr.msk.f32.gmra.mrb[24].mxu0 %vm263_vm1, %v248_v31  ;;  %v2272_v31 = vld [vmem:[%s4794_s3] sm:$0xff] }
  0x4e   : > { %2948 = vmatprep.mubr.msk.f32.mxu0 %vm263_vm1, %v249_v32  ;;  %v2273_v32 = vld [vmem:[%s4794_s3 + $0x8] sm:$0xff] }
  0x51   : > { %2949 = vmatmul.mubr.msk.f32.gmra.mrb[26].mxu0 %vm263_vm1, %v250_v33  ;;  %v3019_v33 = vpack.c.bf16 %v2273_v32, %v2272_v31 }
  0x52   : > { %2951 = vmatprep.mubr.msk.f32.mxu0 %vm263_vm1, %v251_v34 }
  0x53   : > { %3031 = vmatprep.subr.bf16.mxu1 %v3019_v33  ;;  %3020 = vmatprep.subr.bf16.mxu0 %v3019_v33 }
  0x54   : > { %3035 = vmatpush3.bf16.msra.mxu1 %v3019_v33  ;;  %3022 = vmatpush3.bf16.msra.mxu0 %v3019_v33 }
  0x55   : > { %2952 = vmatmul.mubr.msk.f32.gmra.mrb[28].mxu0 %vm263_vm1, %v252_v35  ;;  %v2274_v35 = vld [vmem:[%s4794_s3 + $0x10] sm:$0xff] }
  0xf0   : > { %v2911_v37 = vpop.f32.mrb[0].mxu0 }
  0xf1   : > { %v436_v38 = vadd.f32 %v2911_v37, %v3358_v36  ;;  %v430_v39 = vpop.f32.mrb[1].mxu0  ;;  %v2275_v37 = vld [vmem:[%s4794_s3 + $0x18] sm:$0xff] }
  0xf2   : > { %v431_v40 = vadd.f32 %v3358_v36, %v430_v39 }
  0xf3   : > { %v590_v41 = vmax.f32 %v436_v38, 0.0  ;;  %v3023_v38 = vpack.c.bf16 %v2275_v37, %v2274_v35 }
  0xf4   : > { %v589_v42 = vmax.f32 %v431_v40, 0.0  ;;  %v2914_v43 = vpop.f32.mrb[2].mxu0  ;;  %v2276_v40 = vld [vmem:[%s4794_s3 + $0x20] sm:$0xff] }
  0xf5   : > { %665 = vst.msk [vmem:[#allocation2 + $0x21] sm:$0xff] %vm621_vm2, %v590_v41  ;;  %v446_v44 = vadd.f32 %v2914_v43, %v3358_v36  ;;  %v440_v45 = vpop.f32.mrb[3].mxu0  ;;  %3032 = vmatprep.subr.bf16.mxu1 %v3023_v38  ;;  %v2277_v41 = vld [vmem:[%s4794_s3 + $0x28] sm:$0xff]  ;;  %3024 = vmatprep.subr.bf16.mxu0 %v3023_v38 }
  0xf6   : > { %664 = vst.msk [vmem:[#allocation2 + $0x19] sm:$0xff] %vm621_vm2, %v589_v42  ;;  %v441_v46 = vadd.f32 %v3358_v36, %v440_v45  ;;  %3036 = vmatpush3.bf16.msra.mxu1 %v3023_v38  ;;  %v3027_v43 = vpack.c.bf16 %v2277_v41, %v2276_v40  ;;  %3026 = vmatpush3.bf16.msra.mxu0 %v3023_v38 }
  0xf7   : > { %v592_v47 = vmax.f32 %v446_v44, 0.0 }
  0xf8   : > { %v591_v48 = vmax.f32 %v441_v46, 0.0  ;;  %v2917_v49 = vpop.f32.mrb[4].mxu0  ;;  %3033 = vmatprep.subr.bf16.mxu1 %v3027_v43  ;;  %3028 = vmatprep.subr.bf16.mxu0 %v3027_v43 }
  0xf9   : > { %667 = vst.msk [vmem:[#allocation2 + $0x39] sm:$0xff] %vm621_vm2, %v592_v47  ;;  %v456_v50 = vadd.f32 %v2917_v49, %v3358_v36  ;;  %v450_v51 = vpop.f32.mrb[5].mxu0  ;;  %v2278_v49 = vld [vmem:[%s4794_s3 + $0x30] sm:$0x3f] }
  0xfa   : > { %666 = vst.msk [vmem:[#allocation2 + $0x31] sm:$0xff] %vm621_vm2, %v591_v48  ;;  %v451_v52 = vadd.f32 %v3358_v36, %v450_v51  ;;  %3037 = vmatpush3.bf16.msra.mxu1 %v3027_v43  ;;  %3030 = vmatpush3.bf16.msra.mxu0 %v3027_v43 }
  0xfb   : > { %v594_v53 = vmax.f32 %v456_v50, 0.0  ;;  %3034 = vmatprep.subr.msk.mxu1 %vm2383_vm5, %v2278_v49  ;;  %2969 = vmatprep.subr.msk.mxu0 %vm2383_vm5, %v2278_v49 }
  0xfc   : > { %v731_v54 = vld [vmem:[#allocation2 + $0x21] sm:$0xff]  ;;  %v593_v55 = vmax.f32 %v451_v52, 0.0  ;;  %v2920_v56 = vpop.f32.mrb[6].mxu0 }
  0xfd   : > { %1023 = vrot.lane.b32.xlu1 %v731_v54, %s3156_s12  ;;  %v762_v57 = vld [vmem:[#allocation2 + $0x1a] sm:$0xff]  ;;  %669 = vst.msk [vmem:[#allocation2 + $0x51] sm:$0xff] %vm621_vm2, %v594_v53  ;;  %v466_v58 = vadd.f32 %v2920_v56, %v3358_v36  ;;  %v460_v59 = vpop.f32.mrb[7].mxu0  ;;  %v763_v62 = vld [vmem:[#allocation2 + $0x22] sm:$0xff] }
  0xfe   : > { %1149 = vrot.lane.b32.xlu0 %v762_v57, %s3157_s13  ;;  %668 = vst.msk [vmem:[#allocation2 + $0x49] sm:$0xff] %vm621_vm2, %v593_v55  ;;  %v461_v60 = vadd.f32 %v3358_v36, %v460_v59  ;;  %v3377_v1 = vld [vmem:[#allocation2 + $0x18] sm:$0xff]  ;;  %v3391_v15 = vld [vmem:[#allocation2 + $0x20] sm:$0xff]  ;;  %3038 = vmatpush3.msk.msra.mxu1 %vm2383_vm5, %v2278_v49 }
  0xff   : > { %v596_v61 = vmax.f32 %v466_v58, 0.0  ;;  %v730_v7 = vld [vmem:[#allocation2 + $0x19] sm:$0xff]  ;;  %2970 = vmatpush3.msk.msra.mxu0 %vm2383_vm5, %v2278_v49 }
 0x100   : > { %v595_v63 = vmax.f32 %v461_v60, 0.0  ;;  %v2923_v0 = vpop.f32.mrb[8].mxu0  ;;  %v827_v5 = vld [vmem:[#allocation2 + $0x39] sm:$0xff] }
 0x101   : > { %1151 = vrot.lane.b32.xlu1 %v763_v62, %s3157_s13  ;;  %671 = vst.msk [vmem:[#allocation2 + $0x69] sm:$0xff] %vm621_vm2, %v596_v61  ;;  %v476_v2 = vadd.f32 %v2923_v0, %v3358_v36  ;;  %v470_v3 = vpop.f32.mrb[9].mxu0  ;;  %v859_v13 = vld [vmem:[#allocation2 + $0x3a] sm:$0xff]  ;;  %v732_v17 = vld [vmem:[#allocation2 + $0x31] sm:$0xff] }
 0x102   : > { %1273 = vrot.lane.b32.xlu0 %v3377_v1, %s3158_s16  ;;  %670 = vst.msk [vmem:[#allocation2 + $0x61] sm:$0xff] %vm621_vm2, %v595_v63  ;;  %v471_v4 = vadd.f32 %v3358_v36, %v470_v3  ;;  %v764_v21 = vld [vmem:[#allocation2 + $0x32] sm:$0xff] }
 0x103   : > { %v598_v6 = vmax.f32 %v476_v2, 0.0  ;;  %v3405_v24 = vld [vmem:[#allocation2 + $0x38] sm:$0xff]  ;;  %v3409_v26 = vld [vmem:[#allocation2 + $0x30] sm:$0xff] }
 0x104   : > { %v597_v8 = vmax.f32 %v471_v4, 0.0  ;;  %v2926_v9 = vpop.f32.mrb[10].mxu0  ;;  %v861_v27 = vld [vmem:[#allocation2 + $0x52] sm:$0xff] }
 0x105   : > { %1021 = vrot.lane.b32.xlu1 %v730_v7, %s3156_s12  ;;  %673 = vst.msk [vmem:[#allocation2 + $0x81] sm:$0xff] %vm621_vm2, %v598_v6  ;;  %v486_v10 = vadd.f32 %v2926_v9, %v3358_v36  ;;  %v480_v11 = vpop.f32.mrb[11].mxu0  ;;  %v734_v28 = vld [vmem:[#allocation2 + $0x49] sm:$0xff]  ;;  %v735_v29 = vld [vmem:[#allocation2 + $0x51] sm:$0xff] }
 0x106   : > { %1407 = vrot.lane.b32.xlu0 %v827_v5, %s3159_s17  ;;  %672 = vst.msk [vmem:[#allocation2 + $0x79] sm:$0xff] %vm621_vm2, %v597_v8  ;;  %v481_v12 = vadd.f32 %v3358_v36, %v480_v11  ;;  %v766_v30 = vld [vmem:[#allocation2 + $0x4a] sm:$0xff] }
 0x107   : > { %v600_v14 = vmax.f32 %v486_v10, 0.0  ;;  %v3427_v34 = vld [vmem:[#allocation2 + $0x48] sm:$0xff]  ;;  %v3438_v39 = vld [vmem:[#allocation2 + $0x50] sm:$0xff]  ;;  %v254_v10 = vld [vmem:[%s3253_s11 + $0xf8] sm:$0xff] }
 0x108   : > { %v599_v16 = vmax.f32 %v481_v12, 0.0  ;;  %v2929_v18 = vpop.f32.mrb[12].mxu0  ;;  %v863_v50 = vld [vmem:[#allocation2 + $0x6a] sm:$0xff] }
 0x109   : > { %1275 = vrot.lane.b32.xlu1 %v3391_v15, %s3158_s16  ;;  %675 = vst.msk [vmem:[#allocation2 + $0x99] sm:$0xff] %vm621_vm2, %v600_v14  ;;  %v496_v19 = vadd.f32 %v2929_v18, %v3358_v36  ;;  %v490_v22 = vpop.f32.mrb[13].mxu0  ;;  %v736_v51 = vld [vmem:[#allocation2 + $0x61] sm:$0xff]  ;;  %v737_v52 = vld [vmem:[#allocation2 + $0x69] sm:$0xff] }
 0x10a   : > { %1535 = vrot.lane.b32.xlu0 %v859_v13, %s3160_s23  ;;  %674 = vst.msk [vmem:[#allocation2 + $0x91] sm:$0xff] %vm621_vm2, %v599_v16  ;;  %v491_v23 = vadd.f32 %v3358_v36, %v490_v22  ;;  %v768_v53 = vld [vmem:[#allocation2 + $0x62] sm:$0xff]  ;;  %v253_v7 = vld [vmem:[%s3253_s11 + $0xf0] sm:$0xff]  ;;  %s3095_s11 = sshll.u32 %s3164_s9, 4  ;;  %s3096_s11 = int_to_ptr.vmem [resolvable:$false] %s3095_s11 }
 0x10b   : > { %v602_v20 = vmax.f32 %v496_v19, 0.0  ;;  %v3473_v60 = vld [vmem:[#allocation2 + $0x60] sm:$0xff]  ;;  %v3479_v61 = vld [vmem:[#allocation2 + $0x68] sm:$0xff]  ;;  %2954 = vmatprep.mubr.msk.f32.mxu0 %vm263_vm1, %v253_v7 }
 0x10c   : > { %v601_v25 = vmax.f32 %v491_v23, 0.0  ;;  %v2932_v42 = vpop.f32.mrb[14].mxu0  ;;  %2955 = vmatmul.mubr.msk.f32.gmra.mrb[30].mxu0 %vm263_vm1, %v254_v10  ;;  %v739_v16 = vld [vmem:[#allocation2 + $0x81] sm:$0xff] }
 0x10d   : > { %1027 = vrot.lane.b32.xlu1 %v827_v5, %s3156_s12  ;;  %677 = vst.msk [vmem:[#allocation2 + $0xb1] sm:$0xff] %vm621_vm2, %v602_v20  ;;  %v506_v44 = vadd.f32 %v2932_v42, %v3358_v36  ;;  %v500_v45 = vpop.f32.mrb[15].mxu0  ;;  %v865_v5 = vld [vmem:[#allocation2 + $0x82] sm:$0xff]  ;;  %v738_v12 = vld [vmem:[#allocation2 + $0x79] sm:$0xff] }
 0x10e   : > { %1025 = vrot.lane.b32.xlu0 %v732_v17, %s3156_s12  ;;  %676 = vst.msk [vmem:[#allocation2 + $0xa9] sm:$0xff] %vm621_vm2, %v601_v25  ;;  %v501_v46 = vadd.f32 %v3358_v36, %v500_v45  ;;  %v770_v18 = vld [vmem:[#allocation2 + $0x7a] sm:$0xff] }
 0x10f   : > { %v604_v47 = vmax.f32 %v506_v44, 0.0 }
 0x110   : > { %v603_v48 = vmax.f32 %v501_v46, 0.0  ;;  %v2935_v54 = vpop.f32.mrb[16].mxu0  ;;  %v867_v46 = vld [vmem:[#allocation2 + $0x9a] sm:$0xff] }
 0x111   : > { %1155 = vrot.lane.b32.xlu1 %v859_v13, %s3157_s13  ;;  %679 = vst.msk [vmem:[#allocation2 + $0xc9] sm:$0xff] %vm621_vm2, %v604_v47  ;;  %v516_v55 = vadd.f32 %v2935_v54, %v3358_v36  ;;  %v510_v56 = vpop.f32.mrb[17].mxu0 }
 0x112   : > { %1153 = vrot.lane.b32.xlu0 %v764_v21, %s3157_s13  ;;  %678 = vst.msk [vmem:[#allocation2 + $0xc1] sm:$0xff] %vm621_vm2, %v603_v48  ;;  %v511_v58 = vadd.f32 %v3358_v36, %v510_v56 }
 0x113   : > { %v606_v57 = vmax.f32 %v516_v55, 0.0 }
 0x114   : > { %v605_v59 = vmax.f32 %v511_v58, 0.0  ;;  %v2938_v62 = vpop.f32.mrb[18].mxu0 }
 0x115   : > { %1279 = vrot.lane.b32.xlu1 %v3405_v24, %s3158_s16  ;;  %681 = vst.msk [vmem:[#allocation2 + $0xe1] sm:$0xff] %vm621_vm2, %v606_v57  ;;  %v526_v63 = vadd.f32 %v2938_v62, %v3358_v36  ;;  %v520_v0 = vpop.f32.mrb[19].mxu0  ;;  %v741_v57 = vld [vmem:[#allocation2 + $0x99] sm:$0xff] }
 0x116   : > { %1277 = vrot.lane.b32.xlu0 %v3409_v26, %s3158_s16  ;;  %680 = vst.msk [vmem:[#allocation2 + $0xd9] sm:$0xff] %vm621_vm2, %v605_v59  ;;  %v521_v2 = vadd.f32 %v3358_v36, %v520_v0  ;;  %v772_v59 = vld [vmem:[#allocation2 + $0x92] sm:$0xff] }
 0x117   : > { %v608_v3 = vmax.f32 %v526_v63, 0.0 }
 0x118   : > { %v607_v4 = vmax.f32 %v521_v2, 0.0  ;;  %v2941_v6 = vpop.f32.mrb[20].mxu0 }
 0x119   : > { %1405 = vrot.lane.b32.xlu1 %v732_v17, %s3159_s17  ;;  %683 = vst.msk [vmem:[#allocation2 + $0xf9] sm:$0xff] %vm621_vm2, %v608_v3  ;;  %v536_v8 = vadd.f32 %v2941_v6, %v3358_v36  ;;  %v530_v9 = vpop.f32.mrb[21].mxu0  ;;  %v3506_v17 = vpop.permute.xlu0 %1017 }
 0x11a   : > { %1539 = vrot.lane.b32.xlu0 %v861_v27, %s3160_s23  ;;  %682 = vst.msk [vmem:[#allocation2 + $0xf1] sm:$0xff] %vm621_vm2, %v607_v4  ;;  %v531_v11 = vadd.f32 %v3358_v36, %v530_v9  ;;  %4815 = vst [vmem:[#allocation6_spill] sm:$0xff] %v3506_v17 }
 0x11b   : > { %v610_v13 = vmax.f32 %v536_v8, 0.0  ;;  %v3581_v8 = vld [vmem:[#allocation2 + $0x90] sm:$0xff] }
 0x11c   : > { %v609_v14 = vmax.f32 %v531_v11, 0.0  ;;  %v2944_v20 = vpop.f32.mrb[22].mxu0 }
 0x11d   : > { %1533 = vrot.lane.b32.xlu1 %v764_v21, %s3160_s23  ;;  %685 = vst.msk [vmem:[#allocation2 + $0x111] sm:$0xff] %vm621_vm2, %v610_v13  ;;  %v3511_v19 = vpop.permute.xlu0 %1019  ;;  %v3514_v21 = vld [vmem:[#allocation2 + $0x78] sm:$0xff]  ;;  %v546_v22 = vadd.f32 %v2944_v20, %v3358_v36  ;;  %v540_v23 = vpop.f32.mrb[23].mxu0 }
 0x11e   : > { %1029 = vrot.lane.b32.xlu0 %v734_v28, %s3156_s12  ;;  %684 = vst.msk [vmem:[#allocation2 + $0x109] sm:$0xff] %vm621_vm2, %v609_v14  ;;  %4816 = vst [vmem:[#allocation7_spill] sm:$0xff] %v3511_v19  ;;  %v541_v25 = vadd.f32 %v3358_v36, %v540_v23 }
 0x120   : > { %v2947_v35 = vpop.f32.mrb[24].mxu0 }
 0x121   : > { %1031 = vrot.lane.b32.xlu1 %v735_v29, %s3156_s12  ;;  %v3528_v31 = vpop.permute.xlu0 %1145  ;;  %v556_v37 = vadd.f32 %v2947_v35, %v3358_v36  ;;  %v550_v38 = vpop.f32.mrb[25].mxu0  ;;  %v743_v35 = vld [vmem:[#allocation2 + $0xb1] sm:$0xff] }
 0x122   : > { %1157 = vrot.lane.b32.xlu0 %v766_v30, %s3157_s13  ;;  %4818 = vst [vmem:[#allocation9_spill] sm:$0xff] %v3528_v31  ;;  %v551_v40 = vadd.f32 %v3358_v36, %v550_v38  ;;  %v774_v38 = vld [vmem:[#allocation2 + $0xaa] sm:$0xff] }
 0x123   : > { %v614_v42 = vmax.f32 %v556_v37, 0.0 }
 0x124   : > { %v613_v44 = vmax.f32 %v551_v40, 0.0  ;;  %v2950_v48 = vpop.f32.mrb[26].mxu0 }
 0x125   : > { %1159 = vrot.lane.b32.xlu1 %v861_v27, %s3157_s13  ;;  %689 = vst.msk [vmem:[#allocation2 + $0x141] sm:$0xff] %vm621_vm2, %v614_v42  ;;  %v566_v49 = vadd.f32 %v2950_v48, %v3358_v36  ;;  %v3628_v48 = vld [vmem:[#allocation2 + $0xa8] sm:$0xff] }
 0x126   : > { %1281 = vrot.lane.b32.xlu0 %v3427_v34, %s3158_s16  ;;  %688 = vst.msk [vmem:[#allocation2 + $0x139] sm:$0xff] %vm621_vm2, %v613_v44  ;;  %4822 = vst [vmem:[#allocation13_spill] sm:$0xff] %v3628_v48 }
 0x127   : > { %v616_v54 = vmax.f32 %v566_v49, 0.0 }
 0x129   : > { %1791 = vrot.lane.b32.xlu1 %v735_v29, %s3161_s14  ;;  %691 = vst.msk [vmem:[#allocation2 + $0x159] sm:$0xff] %vm621_vm2, %v616_v54 }
 0x12a   : > { %1663 = vrot.lane.b32.xlu0 %v3438_v39, %s3162_s15 }
 0x12c   : > { %v3915_v31 = vld [vmem:[#allocation2 + $0x141] sm:$0xff] }
 0x12d   : > { %1411 = vrot.lane.b32.xlu1 %v735_v29, %s3159_s17  ;;  %v3521_v29 = vld [vmem:[#allocation2 + $0x80] sm:$0xff] }
 0x12e   : > { %1409 = vrot.lane.b32.xlu0 %v734_v28, %s3159_s17 }
 0x131   : > { %1919 = vrot.lane.b32.xlu1 %v861_v27, %s3163_s7  ;;  %v612_v27 = vmax.f32 %v546_v22, 0.0  ;;  %v869_v22 = vld [vmem:[#allocation2 + $0xb2] sm:$0xff] }
 0x132   : > { %1917 = vrot.lane.b32.xlu0 %v766_v30, %s3163_s7 }
 0x133   : > { %687 = vst.msk [vmem:[#allocation2 + $0x129] sm:$0xff] %vm621_vm2, %v612_v27  ;;  %v3613_v27 = vld [vmem:[#allocation2 + $0xa9] sm:$0xff] }
 0x135   : > { %1283 = vrot.lane.b32.xlu1 %v3438_v39, %s3158_s16 }
 0x136   : > { %1537 = vrot.lane.b32.xlu0 %v766_v30, %s3160_s23  ;;  %v3523_v30 = vpop.permute.xlu1 %1147 }
 0x137   : > { %4817 = vst [vmem:[#allocation8_spill] sm:$0xff] %v3523_v30  ;;  %v3839_v30 = vld [vmem:[#allocation2 + $0xf8] sm:$0xff] }
 0x139   : > { %1661 = vrot.lane.b32.xlu1 %v3427_v34, %s3162_s15 }
 0x13a   : > { %1543 = vrot.lane.b32.xlu0 %v863_v50, %s3160_s23  ;;  %v3909_v19 = vld [vmem:[#allocation2 + $0x12a] sm:$0xff] }
 0x13d   : > { %1789 = vrot.lane.b32.xlu1 %v734_v28, %s3161_s14  ;;  %v611_v28 = vmax.f32 %v541_v25, 0.0 }
 0x13e   : > { %1033 = vrot.lane.b32.xlu0 %v736_v51, %s3156_s12 }
 0x13f   : > { %686 = vst.msk [vmem:[#allocation2 + $0x121] sm:$0xff] %vm621_vm2, %v611_v28 }
 0x141   : > { %1035 = vrot.lane.b32.xlu1 %v737_v52, %s3156_s12 }
 0x142   : > { %1161 = vrot.lane.b32.xlu0 %v768_v53, %s3157_s13 }
 0x145   : > { %1163 = vrot.lane.b32.xlu1 %v863_v50, %s3157_s13 }
 0x146   : > { %1285 = vrot.lane.b32.xlu0 %v3473_v60, %s3158_s16 }
 0x149   : > { %1795 = vrot.lane.b32.xlu1 %v737_v52, %s3161_s14 }
 0x14a   : > { %1667 = vrot.lane.b32.xlu0 %v3479_v61, %s3162_s15 }
 0x14d   : > { %1415 = vrot.lane.b32.xlu1 %v737_v52, %s3159_s17 }
 0x14e   : > { %1413 = vrot.lane.b32.xlu0 %v736_v51, %s3159_s17 }
 0x151   : > { %1923 = vrot.lane.b32.xlu1 %v863_v50, %s3163_s7  ;;  %v560_v50 = vpop.f32.mrb[27].mxu0 }
 0x152   : > { %1921 = vrot.lane.b32.xlu0 %v768_v53, %s3163_s7  ;;  %v2953_v62 = vpop.f32.mrb[28].mxu0 }
 0x153   : > { %v576_v0 = vadd.f32 %v2953_v62, %v3358_v36  ;;  %v570_v2 = vpop.f32.mrb[29].mxu0 }
 0x154   : > { %v571_v4 = vadd.f32 %v3358_v36, %v570_v2 }
 0x155   : > { %1287 = vrot.lane.b32.xlu1 %v3479_v61, %s3158_s16  ;;  %v618_v3 = vmax.f32 %v576_v0, 0.0 }
 0x156   : > { %1541 = vrot.lane.b32.xlu0 %v768_v53, %s3160_s23  ;;  %v740_v53 = vld [vmem:[#allocation2 + $0x91] sm:$0xff]  ;;  %v617_v7 = vmax.f32 %v571_v4, 0.0 }
 0x157   : > { %693 = vst.msk [vmem:[#allocation2 + $0x171] sm:$0xff] %vm621_vm2, %v618_v3 }
 0x158   : > { %692 = vst.msk [vmem:[#allocation2 + $0x169] sm:$0xff] %vm621_vm2, %v617_v7 }
 0x159   : > { %1665 = vrot.lane.b32.xlu1 %v3473_v60, %s3162_s15 }
 0x15a   : > { %1547 = vrot.lane.b32.xlu0 %v865_v5, %s3160_s23 }
 0x15d   : > { %1793 = vrot.lane.b32.xlu1 %v736_v51, %s3161_s14  ;;  %v561_v51 = vadd.f32 %v3358_v36, %v560_v50  ;;  %v3587_v36 = vld [vmem:[#allocation2 + $0x98] sm:$0xff] }
 0x15e   : > { %1037 = vrot.lane.b32.xlu0 %v738_v12, %s3156_s12  ;;  %4821 = vst [vmem:[#allocation12_spill] sm:$0xff] %v3587_v36 }
 0x15f   : > { %v615_v56 = vmax.f32 %v561_v51, 0.0 }
 0x161   : > { %1039 = vrot.lane.b32.xlu1 %v739_v16, %s3156_s12  ;;  %690 = vst.msk [vmem:[#allocation2 + $0x151] sm:$0xff] %vm621_vm2, %v615_v56 }
 0x162   : > { %1165 = vrot.lane.b32.xlu0 %v770_v18, %s3157_s13 }
 0x165   : > { %1167 = vrot.lane.b32.xlu1 %v865_v5, %s3157_s13 }
 0x166   : > { %1289 = vrot.lane.b32.xlu0 %v3514_v21, %s3158_s16 }
 0x169   : > { %1799 = vrot.lane.b32.xlu1 %v739_v16, %s3161_s14 }
 0x16a   : > { %1671 = vrot.lane.b32.xlu0 %v3521_v29, %s3162_s15 }
 0x16d   : > { %1419 = vrot.lane.b32.xlu1 %v739_v16, %s3159_s17 }
 0x16e   : > { %1417 = vrot.lane.b32.xlu0 %v738_v12, %s3159_s17 }
 0x16f   : > { %v3533_v32 = vpop.permute.xlu1 %1023 }
 0x170   : > { %v3535_v33 = vpop.permute.xlu0 %1149 }
 0x171   : > { %1927 = vrot.lane.b32.xlu1 %v865_v5, %s3163_s7 }
 0x172   : > { %1925 = vrot.lane.b32.xlu0 %v770_v18, %s3163_s7 }
 0x173   : > { %v3541_v41 = vpop.permute.xlu1 %1151 }
 0x174   : > { %v3543_v43 = vpop.permute.xlu0 %1273 }
 0x175   : > { %4819 = vst [vmem:[#allocation10_spill] sm:$0xff] %v3543_v43  ;;  %1291 = vrot.lane.b32.xlu1 %v3521_v29, %s3158_s16 }
 0x176   : > { %1545 = vrot.lane.b32.xlu0 %v770_v18, %s3160_s23 }
 0x177   : > { %v3550_v45 = vpop.permute.xlu1 %1021 }
 0x178   : > { %v3552_v47 = vpop.permute.xlu0 %1407 }
 0x179   : > { %1669 = vrot.lane.b32.xlu1 %v3514_v21, %s3162_s15 }
 0x17a   : > { %1551 = vrot.lane.b32.xlu0 %v867_v46, %s3160_s23 }
 0x17b   : > { %v3559_v52 = vpop.permute.xlu1 %1275 }
 0x17c   : > { %4820 = vst [vmem:[#allocation11_spill] sm:$0xff] %v3559_v52  ;;  %v3561_v55 = vpop.permute.xlu0 %1535  ;;  %v3822_v52 = vld [vmem:[#allocation2 + $0xfa] sm:$0xff] }
 0x17d   : > { %1797 = vrot.lane.b32.xlu1 %v738_v12, %s3161_s14 }
 0x17e   : > { %1041 = vrot.lane.b32.xlu0 %v740_v53, %s3156_s12 }
 0x17f   : > { %v3567_v58 = vpop.permute.xlu1 %1027 }
 0x180   : > { %v3569_v63 = vpop.permute.xlu0 %1025 }
 0x181   : > { %1043 = vrot.lane.b32.xlu1 %v741_v57, %s3156_s12 }
 0x182   : > { %1169 = vrot.lane.b32.xlu0 %v772_v59, %s3157_s13 }
 0x183   : > { %v3575_v5 = vpop.permute.xlu1 %1155 }
 0x184   : > { %v3577_v6 = vpop.permute.xlu0 %1153 }
 0x185   : > { %1171 = vrot.lane.b32.xlu1 %v867_v46, %s3157_s13 }
 0x186   : > { %1293 = vrot.lane.b32.xlu0 %v3581_v8, %s3158_s16 }
 0x187   : > { %v1280_v9 = vpop.permute.xlu1 %1279 }
 0x188   : > { %v1278_v10 = vpop.permute.xlu0 %1277 }
 0x189   : > { %1803 = vrot.lane.b32.xlu1 %v741_v57, %s3161_s14 }
 0x18a   : > { %1675 = vrot.lane.b32.xlu0 %v3587_v36, %s3162_s15 }
 0x18b   : > { %v1406_v11 = vpop.permute.xlu1 %1405 }
 0x18c   : > { %v3591_v12 = vpop.permute.xlu0 %1539 }
 0x18d   : > { %1423 = vrot.lane.b32.xlu1 %v741_v57, %s3159_s17 }
 0x18e   : > { %1421 = vrot.lane.b32.xlu0 %v740_v53, %s3159_s17 }
 0x18f   : > { %v1534_v13 = vpop.permute.xlu1 %1533 }
 0x190   : > { %v3595_v14 = vpop.permute.xlu0 %1029 }
 0x191   : > { %1931 = vrot.lane.b32.xlu1 %v867_v46, %s3163_s7  ;;  %v2012_v46 = vsel %vm621_vm2, %v3391_v15, %v3533_v32  ;;  %v3641_v32 = vld [vmem:[#allocation2 + $0xb0] sm:$0xff] }
 0x192   : > { %1929 = vrot.lane.b32.xlu0 %v772_v59, %s3163_s7  ;;  %v2045_v49 = vsel %vm2041_vm6, %v2012_v46, %v3541_v41  ;;  %4823 = vst [vmem:[#allocation14_spill] sm:$0xff] %v3641_v32  ;;  %v3699_v46 = vld [vmem:[#allocation2 + $0xc0] sm:$0xff] }
 0x193   : > { %v3599_v16 = vpop.permute.xlu1 %1031  ;;  %v2078_v50 = vsel %vm2074_vm7, %v2045_v49, %v1280_v9  ;;  %4824 = vst [vmem:[#allocation15_spill] sm:$0xff] %v3699_v46 }
 0x194   : > { %v3601_v18 = vpop.permute.xlu0 %1157  ;;  %v2111_v41 = vsel %vm2107_vm8, %v2078_v50, %v3552_v47 }
 0x195   : > { %1295 = vrot.lane.b32.xlu1 %v3587_v36, %s3158_s16 }
 0x196   : > { %1549 = vrot.lane.b32.xlu0 %v772_v59, %s3160_s23  ;;  %v2144_v59 = vsel %vm2140_vm9, %v2111_v41, %v3561_v55  ;;  %v3710_v41 = vld [vmem:[#allocation2 + $0xc8] sm:$0xff] }
 0x197   : > { %v3606_v20 = vpop.permute.xlu1 %1159  ;;  %4825 = vst [vmem:[#allocation16_spill] sm:$0xff] %v3710_v41 }
 0x198   : > { %v3608_v23 = vpop.permute.xlu0 %1281 }
 0x199   : > { %1673 = vrot.lane.b32.xlu1 %v3581_v8, %s3162_s15 }
 0x19a   : > { %1555 = vrot.lane.b32.xlu0 %v869_v22, %s3160_s23 }
 0x19b   : > { %v1792_v25 = vpop.permute.xlu1 %1791 }
 0x19c   : > { %v1664_v28 = vpop.permute.xlu0 %1663 }
 0x19d   : > { %1801 = vrot.lane.b32.xlu1 %v740_v53, %s3161_s14  ;;  %v2011_v53 = vsel %vm621_vm2, %v3377_v1, %v3550_v45  ;;  %v2177_v62 = vsel %vm2173_vm10, %v2144_v59, %v1664_v28  ;;  %v3685_v28 = vld [vmem:[#allocation2 + $0xc2] sm:$0xff] }
 0x19e   : > { %1045 = vrot.lane.b32.xlu0 %v3613_v27, %s3156_s12  ;;  %v2044_v54 = vsel %vm2041_vm6, %v2011_v53, %v3535_v33  ;;  %v2210_v55 = vsel %vm2206_vm11, %v2177_v62, %v1792_v25  ;;  %v2014_v53 = vsel %vm621_vm2, %v3405_v24, %v3567_v58  ;;  %v2013_v24 = vsel %vm621_vm2, %v3409_v26, %v3569_v63 }
 0x19f   : > { %v3618_v37 = vpop.permute.xlu1 %1411  ;;  %v2077_v1 = vsel %vm2074_vm7, %v2044_v54, %v1278_v10  ;;  %v2047_v54 = vsel %vm2041_vm6, %v2014_v53, %v3575_v5  ;;  %v2046_v5 = vsel %vm2041_vm6, %v2013_v24, %v3577_v6  ;;  %v3776_v53 = vld [vmem:[#allocation2 + $0xe1] sm:$0xff] }
 0x1a0   : > { %v3620_v40 = vpop.permute.xlu0 %1409  ;;  %v2110_v57 = vsel %vm2107_vm8, %v2077_v1, %v1406_v11  ;;  %v3784_v24 = vld [vmem:[#allocation2 + $0xe2] sm:$0xff] }
 0x1a1   : > { %1047 = vrot.lane.b32.xlu1 %v743_v35, %s3156_s12  ;;  %v2143_v47 = vsel %vm2140_vm9, %v2110_v57, %v1534_v13  ;;  %v744_v13 = vld [vmem:[#allocation2 + $0xc1] sm:$0xff] }
 0x1a2   : > { %1173 = vrot.lane.b32.xlu0 %v774_v38, %s3157_s13 }
 0x1a3   : > { %v1920_v42 = vpop.permute.xlu1 %1919 }
 0x1a4   : > { %v1918_v44 = vpop.permute.xlu0 %1917  ;;  %v2243_v7 = vsel %vm2239_vm12, %v2210_v55, %v1920_v42 }
 0x1a5   : > { %1175 = vrot.lane.b32.xlu1 %v869_v22, %s3157_s13 }
 0x1a6   : > { %1297 = vrot.lane.b32.xlu0 %v3628_v48, %s3158_s16 }
 0x1a7   : > { %v1284_v51 = vpop.permute.xlu1 %1283 }
 0x1a8   : > { %v3638_v15 = vpop.permute.xlu0 %1537 }
 0x1a9   : > { %1807 = vrot.lane.b32.xlu1 %v743_v35, %s3161_s14 }
 0x1aa   : > { %1679 = vrot.lane.b32.xlu0 %v3641_v32, %s3162_s15 }
 0x1ab   : > { %v1662_v56 = vpop.permute.xlu1 %1661 }
 0x1ac   : > { %v3650_v45 = vpop.permute.xlu0 %1543  ;;  %v2176_v33 = vsel %vm2173_vm10, %v2143_v47, %v1662_v56  ;;  %v2080_v56 = vsel %vm2074_vm7, %v2047_v54, %v1284_v51  ;;  %v3729_v51 = vld [vmem:[#allocation2 + $0xd9] sm:$0xff]  ;;  %v2079_v47 = vsel %vm2074_vm7, %v2046_v5, %v3608_v23 }
 0x1ad   : > { %1427 = vrot.lane.b32.xlu1 %v743_v35, %s3159_s17  ;;  %v2113_v58 = vsel %vm2107_vm8, %v2080_v56, %v3618_v37  ;;  %v3782_v54 = vld [vmem:[#allocation2 + $0xf2] sm:$0xff] }
 0x1ae   : > { %1425 = vrot.lane.b32.xlu0 %v3613_v27, %s3159_s17  ;;  %v2146_v26 = vsel %vm2140_vm9, %v2113_v58, %v3591_v12 }
 0x1af   : > { %v1790_v0 = vpop.permute.xlu1 %1789 }
 0x1b0   : > { %v2209_v2 = vsel %vm2206_vm11, %v2176_v33, %v1790_v0  ;;  %v3662_v3 = vpop.permute.xlu0 %1033  ;;  %v2112_v33 = vsel %vm2107_vm8, %v2079_v47, %v3620_v40  ;;  %v3747_v0 = vld [vmem:[#allocation2 + $0xda] sm:$0xff]  ;;  %v3798_v47 = vld [vmem:[#allocation2 + $0xf0] sm:$0xff] }
 0x1b1   : > { %1935 = vrot.lane.b32.xlu1 %v869_v22, %s3163_s7  ;;  %v2242_v4 = vsel %vm2239_vm12, %v2209_v2, %v1918_v44  ;;  %v2145_v63 = vsel %vm2140_vm9, %v2112_v33, %v3638_v15 }
 0x1b2   : > { %1933 = vrot.lane.b32.xlu0 %v774_v38, %s3163_s7  ;;  %2974 = vmatprep.mubr.msk.f32.mxu1 %vm2286_vm13, %v2242_v4 }
 0x1b3   : > { %v3670_v9 = vpop.permute.xlu1 %1035  ;;  %2975 = vmatmul.mubr.msk.f32.vlgmr.msra.gmra.mrb[0].mxu1 %vm2286_vm13, %v2243_v7 }
 0x1b4   : > { %v3673_v10 = vpop.permute.xlu0 %1161 }
 0x1b5   : > { %1299 = vrot.lane.b32.xlu1 %v3641_v32, %s3158_s16  ;;  %v2018_v32 = vsel %vm621_vm2, %v3479_v61, %v3670_v9  ;;  %v2017_v61 = vsel %vm621_vm2, %v3473_v60, %v3662_v3 }
 0x1b6   : > { %1553 = vrot.lane.b32.xlu0 %v774_v38, %s3160_s23  ;;  %v3691_v38 = vld [vmem:[#allocation2 + $0xc9] sm:$0xff]  ;;  %v2050_v9 = vsel %vm2041_vm6, %v2017_v61, %v3673_v10 }
 0x1b7   : > { %v3678_v11 = vpop.permute.xlu1 %1163  ;;  %v3967_v61 = vld [vmem:[#allocation2 + $0x16a] sm:$0xff] }
 0x1b8   : > { %v3680_v22 = vpop.permute.xlu0 %1285 }
 0x1b9   : > { %1677 = vrot.lane.b32.xlu1 %v3628_v48, %s3162_s15  ;;  %v2051_v48 = vsel %vm2041_vm6, %v2018_v32, %v3678_v11 }
 0x1ba   : > { %1049 = vrot.lane.b32.xlu0 %v744_v13, %s3156_s12 }
 0x1bb   : > { %v1796_v25 = vpop.permute.xlu1 %1795 }
 0x1bc   : > { %v1668_v35 = vpop.permute.xlu0 %1667 }
 0x1bd   : > { %1805 = vrot.lane.b32.xlu1 %v3613_v27, %s3161_s14  ;;  %v3703_v27 = vld [vmem:[#allocation2 + $0xca] sm:$0xff]  ;;  %v2179_v6 = vsel %vm2173_vm10, %v2146_v26, %v1668_v35 }
 0x1be   : > { %1177 = vrot.lane.b32.xlu0 %v3685_v28, %s3157_s13  ;;  %v2212_v12 = vsel %vm2206_vm11, %v2179_v6, %v1796_v25  ;;  %v3766_v25 = vld [vmem:[#allocation2 + $0xd8] sm:$0xff]  ;;  %v3802_v26 = vld [vmem:[#allocation2 + $0x109] sm:$0xff] }
 0x1bf   : > { %v3693_v42 = vpop.permute.xlu1 %1415  ;;  %v3804_v6 = vld [vmem:[#allocation2 + $0xf9] sm:$0xff] }
 0x1c0   : > { %v3695_v44 = vpop.permute.xlu0 %1413 }
 0x1c1   : > { %1051 = vrot.lane.b32.xlu1 %v3691_v38, %s3156_s12 }
 0x1c2   : > { %1301 = vrot.lane.b32.xlu0 %v3699_v46, %s3158_s16 }
 0x1c3   : > { %v1924_v49 = vpop.permute.xlu1 %1923 }
 0x1c4   : > { %v1922_v50 = vpop.permute.xlu0 %1921  ;;  %v2245_v55 = vsel %vm2239_vm12, %v2212_v12, %v1924_v49  ;;  %v3772_v49 = vld [vmem:[#allocation2 + $0xf1] sm:$0xff] }
 0x1c5   : > { %1179 = vrot.lane.b32.xlu1 %v3703_v27, %s3157_s13 }
 0x1c6   : > { %1683 = vrot.lane.b32.xlu0 %v3710_v41, %s3162_s15 }
 0x1c7   : > { %v1288_v1 = vpop.permute.xlu1 %1287 }
 0x1c8   : > { %v3717_v57 = vpop.permute.xlu0 %1541 }
 0x1c9   : > { %1811 = vrot.lane.b32.xlu1 %v3691_v38, %s3161_s14 }
 0x1ca   : > { %1429 = vrot.lane.b32.xlu0 %v744_v13, %s3159_s17 }
 0x1cb   : > { %v1666_v59 = vpop.permute.xlu1 %1665 }
 0x1cc   : > { %v3733_v62 = vpop.permute.xlu0 %1547  ;;  %v2178_v23 = vsel %vm2173_vm10, %v2145_v63, %v1666_v59  ;;  %v3794_v59 = vld [vmem:[#allocation2 + $0xe0] sm:$0xff] }
 0x1cd   : > { %1303 = vrot.lane.b32.xlu1 %v3710_v41, %s3158_s16  ;;  %v3917_v41 = vld [vmem:[#allocation2 + $0x151] sm:$0xff] }
 0x1ce   : > { %1053 = vrot.lane.b32.xlu0 %v3729_v51, %s3156_s12  ;;  %4832 = vst [vmem:[#allocation23_spill] sm:$0xff] %v3917_v41 }
 0x1cf   : > { %v1794_v37 = vpop.permute.xlu1 %1793 }
 0x1d0   : > { %v2211_v40 = vsel %vm2206_vm11, %v2178_v23, %v1794_v37  ;;  %v3750_v2 = vpop.permute.xlu0 %1037  ;;  %v2016_v23 = vsel %vm621_vm2, %v3438_v39, %v3599_v16  ;;  %v2015_v39 = vsel %vm621_vm2, %v3427_v34, %v3595_v14 }
 0x1d1   : > { %1681 = vrot.lane.b32.xlu1 %v3699_v46, %s3162_s15  ;;  %v2244_v15 = vsel %vm2239_vm12, %v2211_v40, %v1922_v50  ;;  %v2049_v37 = vsel %vm2041_vm6, %v2016_v23, %v3606_v20  ;;  %v2048_v20 = vsel %vm2041_vm6, %v2015_v39, %v3601_v18 }
 0x1d2   : > { %1181 = vrot.lane.b32.xlu0 %v3747_v0, %s3157_s13  ;;  %2977 = vmatprep.mubr.msk.f32.mxu1 %vm2286_vm13, %v2244_v15  ;;  %v2082_v40 = vsel %vm2074_vm7, %v2049_v37, %v1288_v1  ;;  %v3818_v15 = vld [vmem:[#allocation2 + $0x10a] sm:$0xff]  ;;  %v2081_v23 = vsel %vm2074_vm7, %v2048_v20, %v3680_v22 }
 0x1d3   : > { %v3760_v4 = vpop.permute.xlu1 %1039  ;;  %2978 = vmatmul.mubr.msk.f32.gmra.mrb[2].mxu1 %vm2286_vm13, %v2245_v55  ;;  %v2115_v16 = vsel %vm2107_vm8, %v2082_v40, %v3693_v42  ;;  %v2114_v34 = vsel %vm2107_vm8, %v2081_v23, %v3695_v44  ;;  %v3847_v42 = vld [vmem:[#allocation2 + $0x108] sm:$0xff]  ;;  %v3860_v20 = vld [vmem:[#allocation2 + $0x111] sm:$0xff] }
 0x1d4   : > { %v3763_v7 = vpop.permute.xlu0 %1165  ;;  %v2148_v14 = vsel %vm2140_vm9, %v2115_v16, %v3650_v45  ;;  %v2147_v18 = vsel %vm2140_vm9, %v2114_v34, %v3717_v57  ;;  %v3855_v44 = vld [vmem:[#allocation2 + $0x121] sm:$0xff] }
 0x1d5   : > { %1809 = vrot.lane.b32.xlu1 %v744_v13, %s3161_s14  ;;  %v3873_v34 = vld [vmem:[#allocation2 + $0x122] sm:$0xff] }
 0x1d6   : > { %1305 = vrot.lane.b32.xlu0 %v3766_v25, %s3158_s16 }
 0x1d7   : > { %v3770_v35 = vpop.permute.xlu1 %1167 }
 0x1d8   : > { %v3774_v50 = vpop.permute.xlu0 %1289 }
 0x1d9   : > { %1055 = vrot.lane.b32.xlu1 %v3776_v53, %s3156_s12 }
 0x1da   : > { %1057 = vrot.lane.b32.xlu0 %v3772_v49, %s3156_s12 }
 0x1db   : > { %v1800_v13 = vpop.permute.xlu1 %1799 }
 0x1dc   : > { %v1672_v56 = vpop.permute.xlu0 %1671 }
 0x1dd   : > { %1183 = vrot.lane.b32.xlu1 %v3784_v24, %s3157_s13  ;;  %v2181_v22 = vsel %vm2173_vm10, %v2148_v14, %v1672_v56 }
 0x1de   : > { %1185 = vrot.lane.b32.xlu0 %v3782_v54, %s3157_s13  ;;  %v2214_v23 = vsel %vm2206_vm11, %v2181_v22, %v1800_v13  ;;  %v3877_v13 = vld [vmem:[#allocation2 + $0x112] sm:$0xff]  ;;  %v3891_v22 = vld [vmem:[#allocation2 + $0x120] sm:$0xff] }
 0x1df   : > { %v3790_v58 = vpop.permute.xlu1 %1419  ;;  %4830 = vst [vmem:[#allocation21_spill] sm:$0xff] %v3891_v22 }
 0x1e0   : > { %v3792_v5 = vpop.permute.xlu0 %1417 }
 0x1e1   : > { %1307 = vrot.lane.b32.xlu1 %v3794_v59, %s3158_s16 }
 0x1e2   : > { %1309 = vrot.lane.b32.xlu0 %v3798_v47, %s3158_s16 }
 0x1e3   : > { %v1928_v33 = vpop.permute.xlu1 %1927 }
 0x1e4   : > { %v1926_v63 = vpop.permute.xlu0 %1925  ;;  %v2247_v56 = vsel %vm2239_vm12, %v2214_v23, %v1928_v33  ;;  %v3897_v23 = vld [vmem:[#allocation2 + $0x129] sm:$0xff] }
 0x1e5   : > { %1059 = vrot.lane.b32.xlu1 %v3804_v6, %s3156_s12 }
 0x1e6   : > { %1061 = vrot.lane.b32.xlu0 %v3802_v26, %s3156_s12 }
 0x1e7   : > { %v3816_v12 = vpop.permute.xlu1 %1291 }
 0x1e8   : > { %v3820_v55 = vpop.permute.xlu0 %1545 }
 0x1e9   : > { %1187 = vrot.lane.b32.xlu1 %v3822_v52, %s3157_s13 }
 0x1ea   : > { %1189 = vrot.lane.b32.xlu0 %v3818_v15, %s3157_s13 }
 0x1eb   : > { %v1670_v1 = vpop.permute.xlu1 %1669 }
 0x1ec   : > { %v3837_v37 = vpop.permute.xlu0 %1551  ;;  %v2180_v40 = vsel %vm2173_vm10, %v2147_v18, %v1670_v1  ;;  %v3887_v18 = vld [vmem:[#allocation2 + $0x110] sm:$0xff] }
 0x1ed   : > { %1311 = vrot.lane.b32.xlu1 %v3839_v30, %s3158_s16  ;;  %4829 = vst [vmem:[#allocation20_spill] sm:$0xff] %v3887_v18 }
 0x1ee   : > { %1313 = vrot.lane.b32.xlu0 %v3847_v42, %s3158_s16 }
 0x1ef   : > { %v1798_v39 = vpop.permute.xlu1 %1797 }
 0x1f0   : > { %v2213_v45 = vsel %vm2206_vm11, %v2180_v40, %v1798_v39  ;;  %v3858_v16 = vpop.permute.xlu0 %1041  ;;  %v3895_v39 = vld [vmem:[#allocation2 + $0x139] sm:$0xff] }
 0x1f1   : > { %1063 = vrot.lane.b32.xlu1 %v3860_v20, %s3156_s12  ;;  %v2246_v57 = vsel %vm2239_vm12, %v2213_v45, %v1926_v63 }
 0x1f2   : > { %1065 = vrot.lane.b32.xlu0 %v3855_v44, %s3156_s12  ;;  %2980 = vmatprep.mubr.msk.f32.mxu1 %vm2286_vm13, %v2246_v57 }
 0x1f3   : > { %v3870_v1 = vpop.permute.xlu1 %1043  ;;  %2981 = vmatmul.mubr.msk.f32.gmra.mrb[4].mxu1 %vm2286_vm13, %v2247_v56  ;;  %v3905_v56 = vld [vmem:[#allocation2 + $0x13a] sm:$0xff] }
 0x1f4   : > { %4826 = vst [vmem:[#allocation17_spill] sm:$0xff] %v3870_v1  ;;  %v3875_v14 = vpop.permute.xlu0 %1169  ;;  %4831 = vst [vmem:[#allocation22_spill] sm:$0xff] %v3905_v56  ;;  %v3930_v1 = vld [vmem:[#allocation2 + $0x152] sm:$0xff] }
 0x1f5   : > { %4827 = vst [vmem:[#allocation18_spill] sm:$0xff] %v3875_v14  ;;  %1191 = vrot.lane.b32.xlu1 %v3877_v13, %s3157_s13  ;;  %v3934_v14 = vld [vmem:[#allocation2 + $0x142] sm:$0xff] }
 0x1f6   : > { %1193 = vrot.lane.b32.xlu0 %v3873_v34, %s3157_s13  ;;  %4833 = vst [vmem:[#allocation24_spill] sm:$0xff] %v3934_v14 }
 0x1f7   : > { %v3883_v33 = vpop.permute.xlu1 %1171 }
 0x1f8   : > { %4828 = vst [vmem:[#allocation19_spill] sm:$0xff] %v3883_v33  ;;  %v3885_v63 = vpop.permute.xlu0 %1293  ;;  %v2084_v33 = vsel %vm2074_vm7, %v2051_v48, %v3816_v12  ;;  %v3945_v48 = vld [vmem:[#allocation2 + $0x159] sm:$0xff]  ;;  %v3949_v12 = vld [vmem:[#allocation2 + $0x169] sm:$0xff] }
 0x1f9   : > { %1315 = vrot.lane.b32.xlu1 %v3887_v18, %s3158_s16  ;;  %v2117_v32 = vsel %vm2107_vm8, %v2084_v33, %v3790_v58 }
 0x1fa   : > { %1317 = vrot.lane.b32.xlu0 %v3891_v22, %s3158_s16  ;;  %v2150_v3 = vsel %vm2140_vm9, %v2117_v32, %v3733_v62  ;;  %v3972_v62 = vld [vmem:[#allocation2 + $0x15a] sm:$0xff] }
 0x1fb   : > { %v1804_v40 = vpop.permute.xlu1 %1803 }
 0x1fc   : > { %v1676_v45 = vpop.permute.xlu0 %1675 }
 0x1fd   : > { %1067 = vrot.lane.b32.xlu1 %v3897_v23, %s3156_s12  ;;  %v2183_v58 = vsel %vm2173_vm10, %v2150_v3, %v1676_v45 }
 0x1fe   : > { %1069 = vrot.lane.b32.xlu0 %v3895_v39, %s3156_s12  ;;  %v2216_v32 = vsel %vm2206_vm11, %v2183_v58, %v1804_v40  ;;  %v3997_v40 = vld [vmem:[#allocation2 + $0x172] sm:$0xff] }
 0x1ff   : > { %v3903_v57 = vpop.permute.xlu1 %1423 }
 0x200   : > { %v3907_v43 = vpop.permute.xlu0 %1421 }
 0x201   : > { %1195 = vrot.lane.b32.xlu1 %v3909_v19, %s3157_s13 }
 0x202   : > { %1197 = vrot.lane.b32.xlu0 %v3905_v56, %s3157_s13 }
 0x203   : > { %v1932_v17 = vpop.permute.xlu1 %1931 }
 0x204   : > { %v1930_v46 = vpop.permute.xlu0 %1929  ;;  %v2249_v45 = vsel %vm2239_vm12, %v2216_v32, %v1932_v17 }
 0x205   : > { %1071 = vrot.lane.b32.xlu1 %v3915_v31, %s3156_s12 }
 0x206   : > { %1073 = vrot.lane.b32.xlu0 %v3917_v41, %s3156_s12  ;;  %v2083_v41 = vsel %vm2074_vm7, %v2050_v9, %v3774_v50  ;;  %v3982_v9 = vld [vmem:[#allocation2 + $0x171] sm:$0xff] }
 0x207   : > { %v1296_v36 = vpop.permute.xlu1 %1295  ;;  %v2116_v60 = vsel %vm2107_vm8, %v2083_v41, %v3792_v5 }
 0x208   : > { %v3932_v56 = vpop.permute.xlu0 %1549  ;;  %v2149_v10 = vsel %vm2140_vm9, %v2116_v60, %v3820_v55 }
 0x209   : > { %1199 = vrot.lane.b32.xlu1 %v3934_v14, %s3157_s13 }
 0x20a   : > { %1201 = vrot.lane.b32.xlu0 %v3930_v1, %s3157_s13 }
 0x20b   : > { %v1674_v11 = vpop.permute.xlu1 %1673 }
 0x20c   : > { %v3953_v14 = vpop.permute.xlu0 %1555  ;;  %v2182_v50 = vsel %vm2173_vm10, %v2149_v10, %v1674_v11 }
 0x20d   : > { %1075 = vrot.lane.b32.xlu1 %v3945_v48, %s3156_s12 }
 0x20e   : > { %1077 = vrot.lane.b32.xlu0 %v3949_v12, %s3156_s12 }
 0x20f   : > { %v1802_v33 = vpop.permute.xlu1 %1801 }
 0x210   : > { %v2215_v41 = vsel %vm2206_vm11, %v2182_v50, %v1802_v33  ;;  %v3970_v5 = vpop.permute.xlu0 %1045 }
 0x211   : > { %1203 = vrot.lane.b32.xlu1 %v3972_v62, %s3157_s13  ;;  %v2248_v55 = vsel %vm2239_vm12, %v2215_v41, %v1930_v46  ;;  %v2020_v41 = vsel %vm621_vm2, %v3521_v29, %v3760_v4  ;;  %v2019_v29 = vsel %vm621_vm2, %v3514_v21, %v3750_v2  ;;  %v2956_v2 = vpop.f32.mrb[30].mxu0 }
 0x212   : > { %1205 = vrot.lane.b32.xlu0 %v3967_v61, %s3157_s13  ;;  %2983 = vmatprep.mubr.msk.f32.mxu1 %vm2286_vm13, %v2248_v55 }
 0x213   : > { %v3984_v11 = vpop.permute.xlu1 %1047  ;;  %2984 = vmatmul.mubr.msk.f32.gmra.mrb[6].mxu1 %vm2286_vm13, %v2249_v45 }
 0x214   : > { %v3987_v60 = vpop.permute.xlu0 %1173 }
 0x215   : > { %1079 = vrot.lane.b32.xlu1 %v3982_v9, %s3156_s12  ;;  %s3097_s12 = scalar_lea.vmem %s3096_s11, 8192 }
 0x216   : > { %1937 = vrot.lane.b32.xlu0 %v3685_v28, %s3163_s7 }
 0x217   : > { %v3993_v17 = vpop.permute.xlu1 %1175 }
 0x218   : > { %v3995_v46 = vpop.permute.xlu0 %1297 }
 0x219   : > { %1207 = vrot.lane.b32.xlu1 %v3997_v40, %s3157_s13  ;;  %s215_s13 = sand.u32 1, %s3145_s19  }
 0x21a   : > { %1557 = vrot.lane.b32.xlu0 %v3685_v28, %s3160_s23  ;;  %s2757_s26 = sshll.u32 %s215_s13, 8 }
 0x21b   : > { %v1808_v3 = vpop.permute.xlu1 %1807  ;;  %s4289_s30 = scalar_lea.vmem [#allocation3], %s2757_s26 }
 0x21c   : > { %v1680_v10 = vpop.permute.xlu0 %1679 }
 0x21d   : > { %1431 = vrot.lane.b32.xlu1 %v3691_v38, %s3159_s17  ;;  %v2053_v38 = vsel %vm2041_vm6, %v2020_v41, %v3770_v35 }
 0x21e   : > { %1559 = vrot.lane.b32.xlu0 %v3703_v27, %s3160_s23 }
 0x21f   : > { %v4007_v58 = vpop.permute.xlu1 %1427 }
 0x220   : > { %v4009_v50 = vpop.permute.xlu0 %1425 }
 0x221   : > { %1939 = vrot.lane.b32.xlu1 %v3703_v27, %s3163_s7  ;;  %v2086_v27 = vsel %vm2074_vm7, %v2053_v38, %v1296_v36  ;;  %v2052_v36 = vsel %vm2041_vm6, %v2019_v29, %v3763_v7  ;;  %v580_v38 = vpop.f32.mrb[31].mxu0 }
 0x222   : > { %1687 = vrot.lane.b32.xlu0 %v3794_v59, %s3162_s15  ;;  %v2119_v4 = vsel %vm2107_vm8, %v2086_v27, %v3903_v57  ;;  %v2085_v45 = vsel %vm2074_vm7, %v2052_v36, %v3885_v63  ;;  %v3089_v63 = vld [vmem:[%s4793_s2] ss:$0 sm:$0xff] }
 0x223   : > { %v1936_v33 = vpop.permute.xlu1 %1935  ;;  %v2152_v21 = vsel %vm2140_vm9, %v2119_v4, %v3837_v37  ;;  %v581_v29 = vadd.f32 %v3089_v63, %v580_v38 }
 0x224   : > { %v1934_v28 = vpop.permute.xlu0 %1933  ;;  %v2185_v7 = vsel %vm2173_vm10, %v2152_v21, %v1680_v10 }
 0x225   : > { %1685 = vrot.lane.b32.xlu1 %v3766_v25, %s3162_s15  ;;  %v2218_v10 = vsel %vm2206_vm11, %v2185_v7, %v1808_v3 }
 0x226   : > { %1433 = vrot.lane.b32.xlu0 %v3729_v51, %s3159_s17 }
 0x227   : > { %v4025_v32 = vpop.permute.xlu1 %1299 }
 0x228   : > { %v4027_v55 = vpop.permute.xlu0 %1553 }
 0x229   : > { %1813 = vrot.lane.b32.xlu1 %v3729_v51, %s3161_s14  ;;  %v2118_v51 = vsel %vm2107_vm8, %v2085_v45, %v3907_v43  ;;  %v586_v43 = vadd.f32 %v3089_v63, %v2956_v2  ;;  %v619_v45 = vmax.f32 %v581_v29, 0.0 }
 0x22a   : > { %1941 = vrot.lane.b32.xlu0 %v3747_v0, %s3163_s7  ;;  %v2151_v57 = vsel %vm2140_vm9, %v2118_v51, %v3932_v56  ;;  %v2251_v51 = vsel %vm2239_vm12, %v2218_v10, %v1936_v33 }
 0x22b   : > { %v1678_v35 = vpop.permute.xlu1 %1677  ;;  %v620_v56 = vmax.f32 %v586_v43, 0.0  ;;  %694 = vst.msk [vmem:[#allocation2 + $0x181] sm:$0xff] %vm621_vm2, %v619_v45 }
 0x22c   : > { %v4042_v41 = vpop.permute.xlu0 %1049  ;;  %v2184_v37 = vsel %vm2173_vm10, %v2151_v57, %v1678_v35 }
 0x22d   : > { %1815 = vrot.lane.b32.xlu1 %v3776_v53, %s3161_s14  ;;  %695 = vst.msk [vmem:[#allocation2 + $0x189] sm:$0xff] %vm621_vm2, %v620_v56  ;;  %v4159_v56 = vld [vmem:[#allocation2 + $0x128] sm:$0xff] }
 0x22e   : > { %1561 = vrot.lane.b32.xlu0 %v3747_v0, %s3160_s23  ;;  %4834 = vst [vmem:[#allocation25_spill] sm:$0xff] %v4159_v56 }
 0x22f   : > { %v1806_v27 = vpop.permute.xlu1 %1805 }
 0x230   : > { %v2217_v4 = vsel %vm2206_vm11, %v2184_v37, %v1806_v27  ;;  %v4060_v36 = vpop.permute.xlu0 %1177 }
 0x231   : > { %1435 = vrot.lane.b32.xlu1 %v3776_v53, %s3159_s17  ;;  %v2250_v0 = vsel %vm2239_vm12, %v2217_v4, %v1934_v28 }
 0x232   : > { %1563 = vrot.lane.b32.xlu0 %v3784_v24, %s3160_s23  ;;  %2986 = vmatprep.mubr.msk.f32.mxu1 %vm2286_vm13, %v2250_v0 }
 0x233   : > { %v4071_v35 = vpop.permute.xlu1 %1051  ;;  %2987 = vmatmul.mubr.msk.f32.gmra.mrb[8].mxu1 %vm2286_vm13, %v2251_v51 }
 0x234   : > { %v4075_v3 = vpop.permute.xlu0 %1301 }
 0x235   : > { %1943 = vrot.lane.b32.xlu1 %v3784_v24, %s3163_s7 }
 0x236   : > { %1691 = vrot.lane.b32.xlu0 %v3839_v30, %s3162_s15 }
 0x237   : > { %v4081_v53 = vpop.permute.xlu1 %1179 }
 0x238   : > { %v4083_v33 = vpop.permute.xlu0 %1683 }
 0x239   : > { %1689 = vrot.lane.b32.xlu1 %v3798_v47, %s3162_s15 }
 0x23a   : > { %1437 = vrot.lane.b32.xlu0 %v3772_v49, %s3159_s17 }
 0x23b   : > { %v4089_v28 = vpop.permute.xlu1 %1811 }
 0x23c   : > { %v4091_v21 = vpop.permute.xlu0 %1429 }
 0x23d   : > { %1817 = vrot.lane.b32.xlu1 %v3772_v49, %s3161_s14 }
 0x23e   : > { %1945 = vrot.lane.b32.xlu0 %v3782_v54, %s3163_s7 }
 0x23f   : > { %v4097_v24 = vpop.permute.xlu1 %1303 }
 0x240   : > { %v4099_v2 = vpop.permute.xlu0 %1053 }
 0x241   : > { %1819 = vrot.lane.b32.xlu1 %v3804_v6, %s3161_s14 }
 0x242   : > { %1565 = vrot.lane.b32.xlu0 %v3782_v54, %s3160_s23 }
 0x243   : > { %v4105_v57 = vpop.permute.xlu1 %1681 }
 0x244   : > { %v4107_v7 = vpop.permute.xlu0 %1181 }
 0x245   : > { %1439 = vrot.lane.b32.xlu1 %v3804_v6, %s3159_s17 }
 0x246   : > { %1567 = vrot.lane.b32.xlu0 %v3822_v52, %s3160_s23 }
 0x247   : > { %v4113_v49 = vpop.permute.xlu1 %1809 }
 0x248   : > { %v4115_v63 = vpop.permute.xlu0 %1305 }
 0x249   : > { %1947 = vrot.lane.b32.xlu1 %v3822_v52, %s3163_s7 }
 0x24a   : > { %1695 = vrot.lane.b32.xlu0 %v3887_v18, %s3162_s15 }
 0x24b   : > { %v4121_v54 = vpop.permute.xlu1 %1055 }
 0x24c   : > { %v4123_v43 = vpop.permute.xlu0 %1057 }
 0x24d   : > { %1693 = vrot.lane.b32.xlu1 %v3847_v42, %s3162_s15 }
 0x24e   : > { %1441 = vrot.lane.b32.xlu0 %v3802_v26, %s3159_s17 }
 0x24f   : > { %v4129_v6 = vpop.permute.xlu1 %1183 }
 0x250   : > { %v4131_v38 = vpop.permute.xlu0 %1185 }
 0x251   : > { %1821 = vrot.lane.b32.xlu1 %v3802_v26, %s3161_s14 }
 0x252   : > { %1949 = vrot.lane.b32.xlu0 %v3818_v15, %s3163_s7 }
 0x253   : > { %v4137_v52 = vpop.permute.xlu1 %1307 }
 0x254   : > { %v4139_v37 = vpop.permute.xlu0 %1309 }
 0x255   : > { %1823 = vrot.lane.b32.xlu1 %v3860_v20, %s3161_s14 }
 0x256   : > { %1569 = vrot.lane.b32.xlu0 %v3818_v15, %s3160_s23 }
 0x257   : > { %v4145_v27 = vpop.permute.xlu1 %1059 }
 0x258   : > { %v4147_v29 = vpop.permute.xlu0 %1061 }
 0x259   : > { %1443 = vrot.lane.b32.xlu1 %v3860_v20, %s3159_s17 }
 0x25a   : > { %1571 = vrot.lane.b32.xlu0 %v3877_v13, %s3160_s23 }
 0x25b   : > { %v4153_v26 = vpop.permute.xlu1 %1187 }
 0x25c   : > { %v4155_v4 = vpop.permute.xlu0 %1189 }
 0x25d   : > { %1951 = vrot.lane.b32.xlu1 %v3877_v13, %s3163_s7 }
 0x25e   : > { %1699 = vrot.lane.b32.xlu0 %v4159_v56, %s3162_s15 }
 0x25f   : > { %v4163_v15 = vpop.permute.xlu1 %1311 }
 0x260   : > { %v4165_v10 = vpop.permute.xlu0 %1313 }
 0x261   : > { %1697 = vrot.lane.b32.xlu1 %v3891_v22, %s3162_s15 }
 0x262   : > { %1319 = vrot.lane.b32.xlu0 %v4159_v56, %s3158_s16 }
 0x263   : > { %v4171_v20 = vpop.permute.xlu1 %1063 }
 0x264   : > { %v4173_v0 = vpop.permute.xlu0 %1065 }
 0x265   : > { %4835 = vst [vmem:[#allocation26_spill] sm:$0xff] %v4173_v0  ;;  %1825 = vrot.lane.b32.xlu1 %v3855_v44, %s3161_s14 }
 0x266   : > { %1827 = vrot.lane.b32.xlu0 %v3897_v23, %s3161_s14 }
 0x267   : > { %v4179_v13 = vpop.permute.xlu1 %1191 }
 0x268   : > { %4836 = vst [vmem:[#allocation27_spill] sm:$0xff] %v4179_v13  ;;  %v4181_v45 = vpop.permute.xlu0 %1193  ;;  %v4277_v13 = vld [vmem:[#allocation2 + $0x150] sm:$0xff] }
 0x269   : > { %4837 = vst [vmem:[#allocation28_spill] sm:$0xff] %v4181_v45  ;;  %1445 = vrot.lane.b32.xlu1 %v3855_v44, %s3159_s17  ;;  %v4199_v45 = vld [vmem:[#allocation2 + $0x138] sm:$0xff] }
 0x26a   : > { %1447 = vrot.lane.b32.xlu0 %v3897_v23, %s3159_s17  ;;  %4841 = vst [vmem:[#allocation32_spill] sm:$0xff] %v4199_v45 }
 0x26b   : > { %v4187_v51 = vpop.permute.xlu1 %1315 }
 0x26c   : > { %v4189_v56 = vpop.permute.xlu0 %1317 }
 0x26d   : > { %4838 = vst [vmem:[#allocation29_spill] sm:$0xff] %v4189_v56  ;;  %1953 = vrot.lane.b32.xlu1 %v3873_v34, %s3163_s7  ;;  %v4211_v56 = vld [vmem:[#allocation2 + $0x140] sm:$0xff] }
 0x26e   : > { %1955 = vrot.lane.b32.xlu0 %v3909_v19, %s3163_s7  ;;  %4844 = vst [vmem:[#allocation35_spill] sm:$0xff] %v4211_v56 }
 0x26f   : > { %v4195_v22 = vpop.permute.xlu1 %1067 }
 0x270   : > { %4839 = vst [vmem:[#allocation30_spill] sm:$0xff] %v4195_v22  ;;  %v4197_v0 = vpop.permute.xlu0 %1069 }
 0x271   : > { %4840 = vst [vmem:[#allocation31_spill] sm:$0xff] %v4197_v0  ;;  %1573 = vrot.lane.b32.xlu1 %v3873_v34, %s3160_s23 }
 0x272   : > { %1701 = vrot.lane.b32.xlu0 %v4199_v45, %s3162_s15 }
 0x273   : > { %v4205_v44 = vpop.permute.xlu1 %1195 }
 0x274   : > { %4842 = vst [vmem:[#allocation33_spill] sm:$0xff] %v4205_v44  ;;  %v4207_v23 = vpop.permute.xlu0 %1197 }
 0x275   : > { %4843 = vst [vmem:[#allocation34_spill] sm:$0xff] %v4207_v23  ;;  %1575 = vrot.lane.b32.xlu1 %v3909_v19, %s3160_s23 }
 0x276   : > { %1703 = vrot.lane.b32.xlu0 %v4211_v56, %s3162_s15 }
 0x277   : > { %v4215_v0 = vpop.permute.xlu1 %1071 }
 0x278   : > { %4845 = vst [vmem:[#allocation36_spill] sm:$0xff] %v4215_v0  ;;  %v4217_v22 = vpop.permute.xlu0 %1073 }
 0x279   : > { %4846 = vst [vmem:[#allocation37_spill] sm:$0xff] %v4217_v22  ;;  %1321 = vrot.lane.b32.xlu1 %v4199_v45, %s3158_s16 }
 0x27a   : > { %1323 = vrot.lane.b32.xlu0 %v4211_v56, %s3158_s16 }
 0x27b   : > { %v4223_v34 = vpop.permute.xlu1 %1199 }
 0x27c   : > { %4847 = vst [vmem:[#allocation38_spill] sm:$0xff] %v4223_v34  ;;  %v4225_v23 = vpop.permute.xlu0 %1201  ;;  %v2021_v34 = vsel %vm621_vm2, %v3581_v8, %v3858_v16 }
 0x27d   : > { %4848 = vst [vmem:[#allocation39_spill] sm:$0xff] %v4225_v23  ;;  %1829 = vrot.lane.b32.xlu1 %v3895_v39, %s3161_s14  ;;  %v4851_v23 = vld [vmem:[#allocation18_spill] sm:$0xff] }
 0x27e   : > { %1831 = vrot.lane.b32.xlu0 %v3915_v31, %s3161_s14  ;;  %v2054_v56 = vsel %vm2041_vm6, %v2021_v34, %v4851_v23 }
 0x27f   : > { %v4231_v19 = vpop.permute.xlu1 %1075 }
 0x280   : > { %4849 = vst [vmem:[#allocation40_spill] sm:$0xff] %v4231_v19  ;;  %v4233_v22 = vpop.permute.xlu0 %1077  ;;  %v2087_v19 = vsel %vm2074_vm7, %v2054_v56, %v3995_v46  ;;  %v4855_v46 = vld [vmem:[#allocation24_spill] sm:$0xff] }
 0x281   : > { %4850 = vst [vmem:[#allocation41_spill] sm:$0xff] %v4233_v22  ;;  %1449 = vrot.lane.b32.xlu1 %v3895_v39, %s3159_s17  ;;  %v4254_v39 = vld [vmem:[%s4795_s4] ss:$0 sm:$0xff]  ;;  %v2120_v8 = vsel %vm2107_vm8, %v2087_v19, %v4009_v50 }
 0x282   : > { %1451 = vrot.lane.b32.xlu0 %v3915_v31, %s3159_s17  ;;  %v4854_v31 = vld [vmem:[#allocation22_spill] sm:$0xff]  ;;  %v2153_v16 = vsel %vm2140_vm9, %v2120_v8, %v4027_v55  ;;  %v4856_v55 = vld [vmem:[#allocation17_spill] sm:$0xff]  ;;  %v4857_v8 = vld [vmem:[#allocation12_spill] sm:$0xff] }
 0x283   : > { %v4245_v0 = vpop.permute.xlu1 %1203  ;;  %v2186_v23 = vsel %vm2173_vm10, %v2153_v16, %v4105_v57  ;;  %v2022_v44 = vsel %vm621_vm2, %v4857_v8, %v4856_v55  ;;  %v4858_v16 = vld [vmem:[#allocation19_spill] sm:$0xff] }
 0x284   : > { %4852 = vst [vmem:[#allocation18_spill] sm:$0xff] %v4245_v0  ;;  %v4249_v22 = vpop.permute.xlu0 %1205  ;;  %v2219_v19 = vsel %vm2206_vm11, %v2186_v23, %v4113_v49  ;;  %v4859_v8 = vld [vmem:[#allocation23_spill] sm:$0xff] }
 0x285   : > { %4853 = vst [vmem:[#allocation42_spill] sm:$0xff] %v4249_v22  ;;  %1957 = vrot.lane.b32.xlu1 %v4854_v31, %s3163_s7 }
 0x286   : > { %1959 = vrot.lane.b32.xlu0 %v4855_v46, %s3163_s7  ;;  %v2976_v56 = vpop.f32.mrb[0].mxu1 }
 0x287   : > { %v2469_v34 = vadd.f32 %v2976_v56, %v4254_v39  ;;  %v4269_v22 = vpop.permute.xlu1 %1079  ;;  %v2463_v50 = vpop.f32.mrb[1].mxu1  ;;  %v2055_v56 = vsel %vm2041_vm6, %v2022_v44, %v4858_v16 }
 0x288   : > { %v2464_v0 = vadd.f32 %v4254_v39, %v2463_v50  ;;  %v1938_v45 = vpop.permute.xlu0 %1937  ;;  %v2088_v23 = vsel %vm2074_vm7, %v2055_v56, %v4025_v32 }
 0x289   : > { %v2615_v18 = vmax.f32 %v2469_v34, 0.0  ;;  %v2252_v57 = vsel %vm2239_vm12, %v2219_v19, %v1938_v45  ;;  %1577 = vrot.lane.b32.xlu1 %v4854_v31, %s3160_s23  ;;  %v2121_v31 = vsel %vm2107_vm8, %v2088_v23, %v4007_v58 }
 0x28a   : > { %v2614_v49 = vmax.f32 %v2464_v0, 0.0  ;;  %1705 = vrot.lane.b32.xlu0 %v4277_v13, %s3162_s15  ;;  %2989 = vmatprep.mubr.msk.f32.mxu1 %vm2286_vm13, %v2252_v57  ;;  %v4297_v0 = vld [vmem:[#allocation2 + $0x158] sm:$0xff] }
 0x28b   : > { %2648 = vst.msk [vmem:[%s4289_s30 + $0x18] sm:$0xff] %vm2644_vm14, %v2615_v18  ;;  %v4293_v45 = vpop.permute.xlu1 %1207  ;;  %v2154_v18 = vsel %vm2140_vm9, %v2121_v31, %v3953_v14  ;;  %v4860_v14 = vld [vmem:[#allocation13_spill] sm:$0xff] }
 0x28c   : > { %2647 = vst.msk [vmem:[%s4289_s30 + $0x10] sm:$0xff] %vm2644_vm14, %v2614_v49  ;;  %v1558_v44 = vpop.permute.xlu0 %1557  ;;  %v2187_v50 = vsel %vm2173_vm10, %v2154_v18, %v4083_v33  ;;  %v2023_v57 = vsel %vm621_vm2, %v4860_v14, %v3970_v5 }
 0x28d   : > { %1579 = vrot.lane.b32.xlu1 %v4855_v46, %s3160_s23  ;;  %v2220_v58 = vsel %vm2206_vm11, %v2187_v50, %v4089_v28  ;;  %v2056_v33 = vsel %vm2041_vm6, %v2023_v57, %v3987_v60  ;;  %v4357_v57 = vld [vmem:[#allocation2 + $0x170] sm:$0xff] }
 0x28e   : > { %1707 = vrot.lane.b32.xlu0 %v4297_v0, %s3162_s15  ;;  %v2089_v16 = vsel %vm2074_vm7, %v2056_v33, %v4075_v3 }
 0x28f   : > { %v1432_v32 = vpop.permute.xlu1 %1431  ;;  %v2122_v49 = vsel %vm2107_vm8, %v2089_v16, %v4091_v21  ;;  %v4861_v21 = vld [vmem:[#allocation14_spill] sm:$0xff] }
 0x290   : > { %v1560_v34 = vpop.permute.xlu0 %1559  ;;  %v2155_v23 = vsel %vm2140_vm9, %v2122_v49, %v1558_v44 }
 0x291   : > { %1325 = vrot.lane.b32.xlu1 %v4277_v13, %s3158_s16 }
 0x292   : > { %1327 = vrot.lane.b32.xlu0 %v4297_v0, %s3158_s16 }
 0x293   : > { %v1940_v46 = vpop.permute.xlu1 %1939 }
 0x294   : > { %v2253_v19 = vsel %vm2239_vm12, %v2220_v58, %v1940_v46  ;;  %v1688_v55 = vpop.permute.xlu0 %1687 }
 0x295   : > { %1833 = vrot.lane.b32.xlu1 %v4859_v8, %s3161_s14  ;;  %2990 = vmatmul.mubr.msk.f32.gmra.mrb[10].mxu1 %vm2286_vm13, %v2253_v19  ;;  %v4350_v19 = vld [vmem:[#allocation2 + $0x168] sm:$0xff] }
 0x296   : > { %1835 = vrot.lane.b32.xlu0 %v3945_v48, %s3161_s14 }
 0x297   : > { %v1686_v28 = vpop.permute.xlu1 %1685 }
 0x298   : > { %v1434_v56 = vpop.permute.xlu0 %1433  ;;  %v2188_v5 = vsel %vm2173_vm10, %v2155_v23, %v1686_v28 }
 0x299   : > { %1453 = vrot.lane.b32.xlu1 %v4859_v8, %s3159_s17 }
 0x29a   : > { %1455 = vrot.lane.b32.xlu0 %v3945_v48, %s3159_s17  ;;  %v2024_v48 = vsel %vm621_vm2, %v4861_v21, %v3984_v11 }
 0x29b   : > { %v1814_v31 = vpop.permute.xlu1 %1813  ;;  %v2057_v50 = vsel %vm2041_vm6, %v2024_v48, %v3993_v17 }
 0x29c   : > { %v2221_v60 = vsel %vm2206_vm11, %v2188_v5, %v1814_v31  ;;  %v1942_v18 = vpop.permute.xlu0 %1941  ;;  %v2090_v46 = vsel %vm2074_vm7, %v2057_v50, %v4097_v24 }
 0x29d   : > { %v2254_v3 = vsel %vm2239_vm12, %v2221_v60, %v1942_v18  ;;  %1961 = vrot.lane.b32.xlu1 %v3930_v1, %s3163_s7  ;;  %v2123_v8 = vsel %vm2107_vm8, %v2090_v46, %v1432_v32 }
 0x29e   : > { %1963 = vrot.lane.b32.xlu0 %v3972_v62, %s3163_s7  ;;  %2992 = vmatprep.mubr.msk.f32.mxu1 %vm2286_vm13, %v2254_v3  ;;  %v2156_v17 = vsel %vm2140_vm9, %v2123_v8, %v1560_v34 }
 0x29f   : > { %v1816_v44 = vpop.permute.xlu1 %1815  ;;  %v2189_v24 = vsel %vm2173_vm10, %v2156_v17, %v1688_v55  ;;  %v4862_v55 = vld [vmem:[#allocation15_spill] sm:$0xff] }
 0x2a0   : > { %v1562_v58 = vpop.permute.xlu0 %1561  ;;  %v2222_v32 = vsel %vm2206_vm11, %v2189_v24, %v1816_v44  ;;  %v2025_v5 = vsel %vm621_vm2, %v4862_v55, %v4042_v41 }
 0x2a1   : > { %1581 = vrot.lane.b32.xlu1 %v3930_v1, %s3160_s23  ;;  %v2058_v60 = vsel %vm2041_vm6, %v2025_v5, %v4060_v36 }
 0x2a2   : > { %1709 = vrot.lane.b32.xlu0 %v4350_v19, %s3162_s15  ;;  %v2091_v3 = vsel %vm2074_vm7, %v2058_v60, %v4115_v63 }
 0x2a3   : > { %v1436_v14 = vpop.permute.xlu1 %1435  ;;  %v2124_v48 = vsel %vm2107_vm8, %v2091_v3, %v1434_v56  ;;  %v4863_v56 = vld [vmem:[#allocation16_spill] sm:$0xff] }
 0x2a4   : > { %v1564_v11 = vpop.permute.xlu0 %1563  ;;  %v2157_v41 = vsel %vm2140_vm9, %v2124_v48, %v1562_v58  ;;  %v2026_v58 = vsel %vm621_vm2, %v4863_v56, %v4071_v35  ;;  %v981_v56 = vld [vmem:[#allocation2 + $0x182] sm:$0xff] }
 0x2a5   : > { %1583 = vrot.lane.b32.xlu1 %v3972_v62, %s3160_s23  ;;  %v2059_v17 = vsel %vm2041_vm6, %v2026_v58, %v4081_v53 }
 0x2a6   : > { %1711 = vrot.lane.b32.xlu0 %v4357_v57, %s3162_s15  ;;  %v2979_v1 = vpop.f32.mrb[2].mxu1 }
 0x2a7   : > { %v2479_v33 = vadd.f32 %v2979_v1, %v4254_v39  ;;  %v1944_v28 = vpop.permute.xlu1 %1943  ;;  %v2473_v16 = vpop.f32.mrb[3].mxu1  ;;  %v2092_v1 = vsel %vm2074_vm7, %v2059_v17, %v4137_v52 }
 0x2a8   : > { %v2255_v49 = vsel %vm2239_vm12, %v2222_v32, %v1944_v28  ;;  %v2474_v34 = vadd.f32 %v4254_v39, %v2473_v16  ;;  %v1692_v23 = vpop.permute.xlu0 %1691  ;;  %v917_v32 = vld [vmem:[#allocation2 + $0x180] sm:$0xff]  ;;  %v918_v16 = vld [vmem:[#allocation2 + $0x188] sm:$0xff] }
 0x2a9   : > { %v2617_v62 = vmax.f32 %v2479_v33, 0.0  ;;  %1329 = vrot.lane.b32.xlu1 %v4350_v19, %s3158_s16  ;;  %2993 = vmatmul.mubr.msk.f32.gmra.mrb[12].mxu1 %vm2286_vm13, %v2255_v49 }
 0x2aa   : > { %v2616_v31 = vmax.f32 %v2474_v34, 0.0  ;;  %1331 = vrot.lane.b32.xlu0 %v4357_v57, %s3158_s16 }
 0x2ab   : > { %2650 = vst.msk [vmem:[%s4289_s30 + $0x28] sm:$0xff] %vm2644_vm14, %v2617_v62  ;;  %v1690_v18 = vpop.permute.xlu1 %1689 }
 0x2ac   : > { %2649 = vst.msk [vmem:[%s4289_s30 + $0x20] sm:$0xff] %vm2644_vm14, %v2616_v31  ;;  %v1438_v21 = vpop.permute.xlu0 %1437  ;;  %v2190_v36 = vsel %vm2173_vm10, %v2157_v41, %v1690_v18  ;;  %v949_v31 = vld [vmem:[#allocation2 + $0x181] sm:$0xff]  ;;  %v2028_v18 = vsel %vm621_vm2, %v3794_v59, %v4121_v54 }
 0x2ad   : > { %1837 = vrot.lane.b32.xlu1 %v3949_v12, %s3161_s14  ;;  %v2061_v41 = vsel %vm2041_vm6, %v2028_v18, %v4129_v6  ;;  %v921_v18 = vld [vmem:[#allocation2 + $0x31] sm:$0xff] }
 0x2ae   : > { %1839 = vrot.lane.b32.xlu0 %v3982_v9, %s3161_s14 }
 0x2af   : > { %v1818_v44 = vpop.permute.xlu1 %1817 }
 0x2b0   : > { %v2223_v50 = vsel %vm2206_vm11, %v2190_v36, %v1818_v44  ;;  %v1946_v46 = vpop.permute.xlu0 %1945 }
 0x2b1   : > { %v2256_v63 = vsel %vm2239_vm12, %v2223_v50, %v1946_v46  ;;  %1457 = vrot.lane.b32.xlu1 %v3949_v12, %s3159_s17  ;;  %v2125_v12 = vsel %vm2107_vm8, %v2092_v1, %v1436_v14  ;;  %v824_v50 = vld [vmem:[#allocation2 + $0x19] sm:$0xff]  ;;  %v2094_v46 = vsel %vm2074_vm7, %v2061_v41, %v4163_v15 }
 0x2b2   : > { %1459 = vrot.lane.b32.xlu0 %v3982_v9, %s3159_s17  ;;  %2995 = vmatprep.mubr.msk.f32.mxu1 %vm2286_vm13, %v2256_v63  ;;  %v2158_v35 = vsel %vm2140_vm9, %v2125_v12, %v1564_v11  ;;  %v922_v41 = vld [vmem:[#allocation2 + $0x39] sm:$0xff] }
 0x2b3   : > { %v1820_v8 = vpop.permute.xlu1 %1819  ;;  %v2191_v53 = vsel %vm2173_vm10, %v2158_v35, %v1692_v23 }
 0x2b4   : > { %v1566_v24 = vpop.permute.xlu0 %1565  ;;  %v2224_v52 = vsel %vm2206_vm11, %v2191_v53, %v1820_v8  ;;  %v950_v8 = vld [vmem:[#allocation2 + $0x189] sm:$0xff]  ;;  %v856_v53 = vld [vmem:[#allocation2 + $0x1a] sm:$0xff] }
 0x2b5   : > { %1965 = vrot.lane.b32.xlu1 %v3967_v61, %s3163_s7 }
 0x2b6   : > { %1967 = vrot.lane.b32.xlu0 %v3997_v40, %s3163_s7 }
 0x2b7   : > { %v1440_v9 = vpop.permute.xlu1 %1439 }
 0x2b8   : > { %v1568_v33 = vpop.permute.xlu0 %1567  ;;  %v2127_v59 = vsel %vm2107_vm8, %v2094_v46, %v1440_v9 }
 0x2b9   : > { %1585 = vrot.lane.b32.xlu1 %v3967_v61, %s3160_s23  ;;  %v2027_v61 = vsel %vm621_vm2, %v3766_v25, %v4099_v2  ;;  %v2160_v17 = vsel %vm2140_vm9, %v2127_v59, %v1568_v33 }
 0x2ba   : > { %1713 = vrot.lane.b32.xlu0 %v917_v32, %s3162_s15  ;;  %v2060_v11 = vsel %vm2041_vm6, %v2027_v61, %v4107_v7  ;;  %v2029_v61 = vsel %vm621_vm2, %v3798_v47, %v4123_v43 }
 0x2bb   : > { %v1948_v28 = vpop.permute.xlu1 %1947  ;;  %v2093_v23 = vsel %vm2074_vm7, %v2060_v11, %v4139_v37 }
 0x2bc   : > { %v2257_v14 = vsel %vm2239_vm12, %v2224_v52, %v1948_v28  ;;  %v1696_v49 = vpop.permute.xlu0 %1695  ;;  %v2126_v55 = vsel %vm2107_vm8, %v2093_v23, %v1438_v21  ;;  %v857_v52 = vld [vmem:[#allocation2 + $0x22] sm:$0xff]  ;;  %v2062_v23 = vsel %vm2041_vm6, %v2029_v61, %v4131_v38  ;;  %v890_v38 = vld [vmem:[#allocation2 + $0x38] sm:$0xff] }
 0x2bd   : > { %1587 = vrot.lane.b32.xlu1 %v3997_v40, %s3160_s23  ;;  %2996 = vmatmul.mubr.msk.f32.gmra.mrb[14].mxu1 %vm2286_vm13, %v2257_v14  ;;  %v2159_v40 = vsel %vm2140_vm9, %v2126_v55, %v1566_v24  ;;  %v2193_v15 = vsel %vm2173_vm10, %v2160_v17, %v1696_v49  ;;  %v982_v49 = vld [vmem:[#allocation2 + $0x18a] sm:$0xff]  ;;  %v984_v61 = vld [vmem:[#allocation2 + $0x1a2] sm:$0xff] }
 0x2be   : > { %1715 = vrot.lane.b32.xlu0 %v918_v16, %s3162_s15 }
 0x2bf   : > { %v1694_v34 = vpop.permute.xlu1 %1693 }
 0x2c0   : > { %v4429_v62 = vpop.permute.xlu0 %1441  ;;  %v2192_v25 = vsel %vm2173_vm10, %v2159_v40, %v1694_v34  ;;  %v889_v34 = vld [vmem:[#allocation2 + $0x30] sm:$0xff] }
 0x2c1   : > { %1333 = vrot.lane.b32.xlu1 %v917_v32, %s3158_s16  ;;  %v825_v32 = vld [vmem:[#allocation2 + $0x21] sm:$0xff] }
 0x2c2   : > { %1335 = vrot.lane.b32.xlu0 %v918_v16, %s3158_s16  ;;  %v2030_v16 = vsel %vm621_vm2, %v3839_v30, %v4145_v27  ;;  %v2095_v30 = vsel %vm2074_vm7, %v2062_v23, %v4165_v10  ;;  %s2834_s16 = sshll.u32 %s3218_s22, 12  ;;  %s4750_s22 = scalar_lea.sflag [#allocation4], %s215_s13 }
 0x2c3   : > { %v1822_v2 = vpop.permute.xlu1 %1821  ;;  %v2063_v11 = vsel %vm2041_vm6, %v2030_v16, %v4153_v26  ;;  %v2128_v43 = vsel %vm2107_vm8, %v2095_v30, %v4429_v62 }
 0x2c4   : > { %v2225_v5 = vsel %vm2206_vm11, %v2192_v25, %v1822_v2  ;;  %v1950_v7 = vpop.permute.xlu0 %1949  ;;  %v2096_v55 = vsel %vm2074_vm7, %v2063_v11, %v4187_v51  ;;  %v919_v2 = vld [vmem:[#allocation2 + $0x198] sm:$0xff] }
 0x2c5   : > { %v2258_v60 = vsel %vm2239_vm12, %v2225_v5, %v1950_v7  ;;  %1841 = vrot.lane.b32.xlu1 %v949_v31, %s3161_s14 }
 0x2c6   : > { %1461 = vrot.lane.b32.xlu0 %v949_v31, %s3159_s17  ;;  %v2982_v37 = vpop.f32.mrb[4].mxu1  ;;  %2998 = vmatprep.mubr.msk.f32.mxu1 %vm2286_vm13, %v2258_v60 }
 0x2c7   : > { %v2489_v3 = vadd.f32 %v2982_v37, %v4254_v39  ;;  %v1824_v21 = vpop.permute.xlu1 %1823  ;;  %v2483_v48 = vpop.f32.mrb[5].mxu1 }
 0x2c8   : > { %v2484_v36 = vadd.f32 %v4254_v39, %v2483_v48  ;;  %v1570_v44 = vpop.permute.xlu0 %1569  ;;  %v2226_v24 = vsel %vm2206_vm11, %v2193_v15, %v1824_v21 }
 0x2c9   : > { %v2619_v63 = vmax.f32 %v2489_v3, 0.0  ;;  %1401 = vrot.lane.b32.xlu1 %v824_v50, %s3159_s17  ;;  %v2161_v40 = vsel %vm2140_vm9, %v2128_v43, %v1570_v44  ;;  %v920_v3 = vld [vmem:[#allocation2 + $0x1a0] sm:$0xff] }
 0x2ca   : > { %v2618_v54 = vmax.f32 %v2484_v36, 0.0  ;;  %1969 = vrot.lane.b32.xlu0 %v981_v56, %s3163_s7  ;;  %v951_v44 = vld [vmem:[#allocation2 + $0x199] sm:$0xff] }
 0x2cb   : > { %2652 = vst.msk [vmem:[%s4289_s30 + $0x38] sm:$0xff] %vm2644_vm14, %v2619_v63  ;;  %v1444_v58 = vpop.permute.xlu1 %1443 }
 0x2cc   : > { %2651 = vst.msk [vmem:[%s4289_s30 + $0x30] sm:$0xff] %vm2644_vm14, %v2618_v54  ;;  %v1572_v6 = vpop.permute.xlu0 %1571  ;;  %v2129_v27 = vsel %vm2107_vm8, %v2096_v55, %v1444_v58  ;;  %v953_v58 = vld [vmem:[#allocation2 + $0x32] sm:$0xff] }
 0x2cd   : > { %1843 = vrot.lane.b32.xlu1 %v950_v8, %s3161_s14  ;;  %v2162_v25 = vsel %vm2140_vm9, %v2129_v27, %v1572_v6 }
 0x2ce   : > { %1463 = vrot.lane.b32.xlu0 %v950_v8, %s3159_s17  ;;  %v952_v8 = vld [vmem:[#allocation2 + $0x1a1] sm:$0xff] }
 0x2cf   : > { %v1952_v1 = vpop.permute.xlu1 %1951 }
 0x2d0   : > { %v2259_v12 = vsel %vm2239_vm12, %v2226_v24, %v1952_v1  ;;  %v1700_v9 = vpop.permute.xlu0 %1699  ;;  %v954_v24 = vld [vmem:[#allocation2 + $0x3a] sm:$0xff] }
 0x2d1   : > { %1403 = vrot.lane.b32.xlu1 %v825_v32, %s3159_s17  ;;  %2999 = vmatmul.mubr.msk.f32.gmra.mrb[16].mxu1 %vm2286_vm13, %v2259_v12  ;;  %v2195_v10 = vsel %vm2173_vm10, %v2162_v25, %v1700_v9  ;;  %v983_v1 = vld [vmem:[#allocation2 + $0x19a] sm:$0xff]  ;;  %v2031_v12 = vsel %vm621_vm2, %v3847_v42, %v4147_v29  ;;  %s2691_s17 = sshll.u32 %s4289_s30, 4  ;;  %s4742_s17 = int_to_ptr.vmem [resolvable:$true] %s2691_s17 }
 0x2d2   : > { %1589 = vrot.lane.b32.xlu0 %v981_v56, %s3160_s23  ;;  %v2064_v32 = vsel %vm2041_vm6, %v2031_v12, %v4155_v4  ;;  %s3091_s8 = scalar_lea.vmem %s4742_s17, 4096  ;;  %p3098_p0 = scmp.lt.s32.totalorder %s4742_s17, %s3096_s11 }
 0x2d3   : > { %v1698_v33 = vpop.permute.xlu1 %1697  ;;  %p3092_p11 = scmp.ne.s32.totalorder %s4742_s17, %s3091_s8  ;;  %p3099_p1 = scmp.lt.s32.totalorder %s3097_s12, %s3091_s8 }
 0x2d4   : > { %v4466_v35 = vpop.permute.xlu0 %1319  ;;  %v2194_v51 = vsel %vm2173_vm10, %v2161_v40, %v1698_v33  ;;  %v4864_v33 = vld [vmem:[#allocation20_spill] sm:$0xff] }
 0x2d5   : > { %1529 = vrot.lane.b32.xlu1 %v856_v53, %s3160_s23  ;;  %v2032_v53 = vsel %vm621_vm2, %v4864_v33, %v4171_v20  ;;  %p3093_p12 = pnand %p3092_p11, %p3235_p5  ;;  %p3100_p2 = por %p3099_p1, %p3098_p0 }
 0x2d6   : > { %1531 = vrot.lane.b32.xlu0 %v857_v52, %s3160_s23 }
 0x2d7   : > { %v1826_v28 = vpop.permute.xlu1 %1825  ;;  %p3094_p13 = pneg %p3093_p12 }
 0x2d8   : > { %v1828_v14 = vpop.permute.xlu0 %1827  ;;  %v2227_v5 = vsel %vm2206_vm11, %v2194_v51, %v1826_v28  ;;  %v4865_v28 = vld [vmem:[#allocation27_spill] sm:$0xff] }
 0x2d9   : > { %1971 = vrot.lane.b32.xlu1 %v982_v49, %s3163_s7  ;;  %v2228_v62 = vsel %vm2206_vm11, %v2195_v10, %v1828_v14  ;;  %v2065_v16 = vsel %vm2041_vm6, %v2032_v53, %v4865_v28  ;;  %v4866_v14 = vld [vmem:[#allocation29_spill] sm:$0xff]  ;;  %p3101_p3 = pnand %p3100_p2, %p3094_p13 }
 0x2da   : > { %1657 = vrot.lane.b32.xlu0 %v889_v34, %s3162_s15  ;;  %v2098_v42 = vsel %vm2074_vm7, %v2065_v16, %v4466_v35 }
 0x2db   : > { %v1446_v47 = vpop.permute.xlu1 %1445 }
 0x2dc   : > { %v1448_v26 = vpop.permute.xlu0 %1447 }
 0x2dd   : > { %1591 = vrot.lane.b32.xlu1 %v982_v49, %s3160_s23  ;;  %v2097_v49 = vsel %vm2074_vm7, %v2064_v32, %v4866_v14  ;;  %v2131_v4 = vsel %vm2107_vm8, %v2098_v42, %v1448_v26 }
 0x2de   : > { %1659 = vrot.lane.b32.xlu0 %v890_v38, %s3162_s15  ;;  %v2130_v29 = vsel %vm2107_vm8, %v2097_v49, %v1446_v47 }
 0x2df   : > { %v1954_v7 = vpop.permute.xlu1 %1953 }
 0x2e0   : > { %v2260_v31 = vsel %vm2239_vm12, %v2227_v5, %v1954_v7  ;;  %v1956_v60 = vpop.permute.xlu0 %1955 }
 0x2e1   : > { %v2261_v37 = vsel %vm2239_vm12, %v2228_v62, %v1956_v60  ;;  %1717 = vrot.lane.b32.xlu1 %v919_v2, %s3162_s15  ;;  %3001 = vmatprep.mubr.msk.f32.mxu1 %vm2286_vm13, %v2260_v31  ;;  %v4867_v62 = vld [vmem:[#allocation26_spill] sm:$0xff]  ;;  %v4868_v31 = vld [vmem:[#allocation21_spill] sm:$0xff] }
 0x2e2   : > { %1785 = vrot.lane.b32.xlu0 %v921_v18, %s3161_s14  ;;  %3002 = vmatmul.mubr.msk.f32.gmra.mrb[18].mxu1 %vm2286_vm13, %v2261_v37  ;;  %v2033_v60 = vsel %vm621_vm2, %v4868_v31, %v4867_v62 }
 0x2e3   : > { %v1574_v21 = vpop.permute.xlu1 %1573 }
 0x2e4   : > { %v1702_v48 = vpop.permute.xlu0 %1701  ;;  %v2163_v11 = vsel %vm2140_vm9, %v2130_v29, %v1574_v21  ;;  %v4869_v21 = vld [vmem:[#allocation28_spill] sm:$0xff] }
 0x2e5   : > { %1719 = vrot.lane.b32.xlu1 %v920_v3, %s3162_s15  ;;  %v2196_v55 = vsel %vm2173_vm10, %v2163_v11, %v1702_v48  ;;  %v2066_v48 = vsel %vm2041_vm6, %v2033_v60, %v4869_v21 }
 0x2e6   : > { %1787 = vrot.lane.b32.xlu0 %v922_v41, %s3161_s14  ;;  %v2985_v36 = vpop.f32.mrb[6].mxu1  ;;  %v4870_v41 = vld [vmem:[#allocation30_spill] sm:$0xff] }
 0x2e7   : > { %v2499_v50 = vadd.f32 %v2985_v36, %v4254_v39  ;;  %v1576_v46 = vpop.permute.xlu1 %1575  ;;  %v2493_v63 = vpop.f32.mrb[7].mxu1  ;;  %v4871_v36 = vld [vmem:[#allocation25_spill] sm:$0xff] }
 0x2e8   : > { %v2494_v56 = vadd.f32 %v4254_v39, %v2493_v63  ;;  %v1704_v59 = vpop.permute.xlu0 %1703  ;;  %v2164_v34 = vsel %vm2140_vm9, %v2131_v4, %v1576_v46  ;;  %v4872_v63 = vld [vmem:[#allocation33_spill] sm:$0xff] }
 0x2e9   : > { %v2621_v54 = vmax.f32 %v2499_v50, 0.0  ;;  %1845 = vrot.lane.b32.xlu1 %v951_v44, %s3161_s14  ;;  %v2197_v30 = vsel %vm2173_vm10, %v2164_v34, %v1704_v59  ;;  %v2034_v44 = vsel %vm621_vm2, %v4871_v36, %v4870_v41  ;;  %v4874_v34 = vld [vmem:[#allocation32_spill] sm:$0xff] }
 0x2ea   : > { %v2620_v6 = vmax.f32 %v2494_v56, 0.0  ;;  %1913 = vrot.lane.b32.xlu0 %v953_v58, %s3163_s7  ;;  %v2067_v56 = vsel %vm2041_vm6, %v2034_v44, %v4872_v63 }
 0x2eb   : > { %2654 = vst.msk [vmem:[%s4289_s30 + $0x48] sm:$0xff] %vm2644_vm14, %v2621_v54  ;;  %v1322_v17 = vpop.permute.xlu1 %1321 }
 0x2ec   : > { %2653 = vst.msk [vmem:[%s4289_s30 + $0x40] sm:$0xff] %vm2644_vm14, %v2620_v6  ;;  %v1324_v15 = vpop.permute.xlu0 %1323  ;;  %v2099_v59 = vsel %vm2074_vm7, %v2066_v48, %v1322_v17 }
 0x2ed   : > { %1847 = vrot.lane.b32.xlu1 %v952_v8, %s3161_s14  ;;  %v2100_v58 = vsel %vm2074_vm7, %v2067_v56, %v1324_v15 }
 0x2ee   : > { %1915 = vrot.lane.b32.xlu0 %v954_v24, %s3163_s7 }
 0x2ef   : > { %v1830_v9 = vpop.permute.xlu1 %1829 }
 0x2f0   : > { %v1832_v52 = vpop.permute.xlu0 %1831  ;;  %v2229_v27 = vsel %vm2206_vm11, %v2196_v55, %v1830_v9 }
 0x2f1   : > { %1973 = vrot.lane.b32.xlu1 %v983_v1, %s3163_s7  ;;  %v2230_v47 = vsel %vm2206_vm11, %v2197_v30, %v1832_v52  ;;  %v4875_v30 = vld [vmem:[#allocation34_spill] sm:$0xff] }
 0x2f3   : > { %v1450_v20 = vpop.permute.xlu1 %1449 }
 0x2f4   : > { %v1452_v23 = vpop.permute.xlu0 %1451  ;;  %v2132_v6 = vsel %vm2107_vm8, %v2099_v59, %v1450_v20  ;;  %v4873_v20 = vld [vmem:[#allocation31_spill] sm:$0xff]  ;;  %v4879_v59 = vld [vmem:[#allocation37_spill] sm:$0xff] }
 0x2f5   : > { %1975 = vrot.lane.b32.xlu1 %v984_v61, %s3163_s7  ;;  %v2133_v24 = vsel %vm2107_vm8, %v2100_v58, %v1452_v23  ;;  %v2035_v23 = vsel %vm621_vm2, %v4874_v34, %v4873_v20  ;;  %s4740_s7 = scalar_lea.hbm %s4796_s5, %s2834_s16 }
 0x2f7   : > { %v1958_v35 = vpop.permute.xlu1 %1957 }
 0x2f8   : > { %v2262_v43 = vsel %vm2239_vm12, %v2229_v27, %v1958_v35  ;;  %v1960_v26 = vpop.permute.xlu0 %1959  ;;  %v2068_v27 = vsel %vm2041_vm6, %v2035_v23, %v4875_v30  ;;  %v4876_v35 = vld [vmem:[#allocation36_spill] sm:$0xff] }
 0x2f9   : > { %v2263_v40 = vsel %vm2239_vm12, %v2230_v47, %v1960_v26  ;;  %3004 = vmatprep.mubr.msk.f32.mxu1 %vm2286_vm13, %v2262_v43  ;;  %v4877_v47 = vld [vmem:[#allocation35_spill] sm:$0xff] }
 0x2fa   : > { %3005 = vmatmul.mubr.msk.f32.gmra.mrb[20].mxu1 %vm2286_vm13, %v2263_v40  ;;  %v2036_v43 = vsel %vm621_vm2, %v4877_v47, %v4876_v35  ;;  %v4878_v40 = vld [vmem:[#allocation38_spill] sm:$0xff] }
 0x2fb   : > { %v1578_v38 = vpop.permute.xlu1 %1577 }
 0x2fc   : > { %v1706_v25 = vpop.permute.xlu0 %1705  ;;  %v2165_v1 = vsel %vm2140_vm9, %v2132_v6, %v1578_v38  ;;  %v2069_v38 = vsel %vm2041_vm6, %v2036_v43, %v4878_v40  ;;  %v4880_v6 = vld [vmem:[#allocation39_spill] sm:$0xff]  ;;  %v696_v40 = vld [vmem:[#allocation2] sm:$0xff] }
 0x2fd   : > { %v2198_v17 = vsel %vm2173_vm10, %v2165_v1, %v1706_v25 }
 0x2ff   : > { %v1580_v51 = vpop.permute.xlu1 %1579 }
 0x300   : > { %v1708_v2 = vpop.permute.xlu0 %1707  ;;  %v2166_v9 = vsel %vm2140_vm9, %v2133_v24, %v1580_v51 }
 0x301   : > { %v2199_v33 = vsel %vm2173_vm10, %v2166_v9, %v1708_v2 }
 0x303   : > { %v1326_v10 = vpop.permute.xlu1 %1325 }
 0x304   : > { %v1328_v5 = vpop.permute.xlu0 %1327  ;;  %v2101_v25 = vsel %vm2074_vm7, %v2068_v27, %v1326_v10 }
 0x305   : > { %v2102_v51 = vsel %vm2074_vm7, %v2069_v38, %v1328_v5  ;;  %v4883_v38 = vld [vmem:[#allocation6_spill] sm:$0xff] }
 0x306   : > { %v2988_v7 = vpop.f32.mrb[8].mxu1 }
 0x307   : > { %v2509_v37 = vadd.f32 %v2988_v7, %v4254_v39  ;;  %v1834_v18 = vpop.permute.xlu1 %1833  ;;  %v2503_v3 = vpop.f32.mrb[9].mxu1 }
 0x308   : > { %v2504_v50 = vadd.f32 %v4254_v39, %v2503_v3  ;;  %v1836_v46 = vpop.permute.xlu0 %1835  ;;  %v2231_v15 = vsel %vm2206_vm11, %v2198_v17, %v1834_v18 }
 0x309   : > { %v2623_v54 = vmax.f32 %v2509_v37, 0.0  ;;  %v2232_v52 = vsel %vm2206_vm11, %v2199_v33, %v1836_v46 }
 0x30a   : > { %v2622_v8 = vmax.f32 %v2504_v50, 0.0 }
 0x30b   : > { %2656 = vst.msk [vmem:[%s4289_s30 + $0x58] sm:$0xff] %vm2644_vm14, %v2623_v54  ;;  %v1454_v12 = vpop.permute.xlu1 %1453  ;;  %v2037_v54 = vsel %vm621_vm2, %v4277_v13, %v4879_v59 }
 0x30c   : > { %2655 = vst.msk [vmem:[%s4289_s30 + $0x50] sm:$0xff] %vm2644_vm14, %v2622_v8  ;;  %v1456_v32 = vpop.permute.xlu0 %1455  ;;  %v2134_v2 = vsel %vm2107_vm8, %v2101_v25, %v1454_v12  ;;  %v2070_v8 = vsel %vm2041_vm6, %v2037_v54, %v4880_v6  ;;  %v2009_v25 = vsel %vm621_vm2, %v696_v40, %v4883_v38  ;;  %v4889_v54 = vld [vmem:[#allocation41_spill] sm:$0xff] }
 0x30d   : > { %v2135_v7 = vsel %vm2107_vm8, %v2102_v51, %v1456_v32  ;;  %v2039_v6 = vsel %vm621_vm2, %v4350_v19, %v4889_v54 }
 0x30f   : > { %v1962_v53 = vpop.permute.xlu1 %1961 }
 0x310   : > { %v2264_v28 = vsel %vm2239_vm12, %v2231_v15, %v1962_v53  ;;  %v1964_v16 = vpop.permute.xlu0 %1963 }
 0x311   : > { %v2265_v14 = vsel %vm2239_vm12, %v2232_v52, %v1964_v16  ;;  %3007 = vmatprep.mubr.msk.f32.mxu1 %vm2286_vm13, %v2264_v28  ;;  %v4881_v16 = vld [vmem:[#allocation40_spill] sm:$0xff] }
 0x312   : > { %3008 = vmatmul.mubr.msk.f32.gmra.mrb[22].mxu1 %vm2286_vm13, %v2265_v14  ;;  %v2038_v14 = vsel %vm621_vm2, %v4297_v0, %v4881_v16 }
 0x313   : > { %v1582_v49 = vpop.permute.xlu1 %1581 }
 0x314   : > { %v1710_v42 = vpop.permute.xlu0 %1709  ;;  %v2167_v62 = vsel %vm2140_vm9, %v2134_v2, %v1582_v49  ;;  %v697_v2 = vld [vmem:[#allocation2 + $0x8] sm:$0xff] }
 0x315   : > { %v2200_v18 = vsel %vm2173_vm10, %v2167_v62, %v1710_v42  ;;  %v4882_v42 = vld [vmem:[#allocation18_spill] sm:$0xff] }
 0x317   : > { %v1584_v29 = vpop.permute.xlu1 %1583 }
 0x318   : > { %v1712_v61 = vpop.permute.xlu0 %1711  ;;  %v2168_v60 = vsel %vm2140_vm9, %v2135_v7, %v1584_v29  ;;  %v2071_v29 = vsel %vm2041_vm6, %v2038_v14, %v4882_v42  ;;  %v4884_v7 = vld [vmem:[#allocation9_spill] sm:$0xff] }
 0x319   : > { %v2201_v3 = vsel %vm2173_vm10, %v2168_v60, %v1712_v61  ;;  %v2042_v62 = vsel %vm2041_vm6, %v2009_v25, %v4884_v7  ;;  %v4885_v60 = vld [vmem:[#allocation7_spill] sm:$0xff] }
 0x31b   : > { %v1330_v4 = vpop.permute.xlu1 %1329 }
 0x31c   : > { %v1332_v11 = vpop.permute.xlu0 %1331  ;;  %v2103_v24 = vsel %vm2074_vm7, %v2070_v8, %v1330_v4 }
 0x31d   : > { %v2104_v4 = vsel %vm2074_vm7, %v2071_v29, %v1332_v11 }
 0x31f   : > { %v1838_v55 = vpop.permute.xlu1 %1837 }
 0x320   : > { %v1840_v26 = vpop.permute.xlu0 %1839  ;;  %v2233_v21 = vsel %vm2206_vm11, %v2200_v18, %v1838_v55  ;;  %v4886_v18 = vld [vmem:[#allocation10_spill] sm:$0xff] }
 0x321   : > { %v2234_v10 = vsel %vm2206_vm11, %v2201_v3, %v1840_v26  ;;  %v2075_v3 = vsel %vm2074_vm7, %v2042_v62, %v4886_v18 }
 0x323   : > { %v1458_v31 = vpop.permute.xlu1 %1457 }
 0x324   : > { %v1460_v37 = vpop.permute.xlu0 %1459  ;;  %v2136_v1 = vsel %vm2107_vm8, %v2103_v24, %v1458_v31 }
 0x325   : > { %v2137_v20 = vsel %vm2107_vm8, %v2104_v4, %v1460_v37  ;;  %v2010_v37 = vsel %vm621_vm2, %v697_v2, %v4885_v60 }
 0x327   : > { %v1966_v48 = vpop.permute.xlu1 %1965 }
 0x328   : > { %v2266_v5 = vsel %vm2239_vm12, %v2233_v21, %v1966_v48  ;;  %v1968_v41 = vpop.permute.xlu0 %1967 }
 0x329   : > { %v2267_v36 = vsel %vm2239_vm12, %v2234_v10, %v1968_v41  ;;  %3010 = vmatprep.mubr.msk.f32.mxu1 %vm2286_vm13, %v2266_v5  ;;  %v4887_v5 = vld [vmem:[#allocation8_spill] sm:$0xff] }
 0x32a   : > { %3011 = vmatmul.mubr.msk.f32.gmra.mrb[24].mxu1 %vm2286_vm13, %v2267_v36  ;;  %v2043_v41 = vsel %vm2041_vm6, %v2010_v37, %v4887_v5 }
 0x32b   : > { %v1586_v44 = vpop.permute.xlu1 %1585 }
 0x32c   : > { %v1714_v50 = vpop.permute.xlu0 %1713  ;;  %v2169_v9 = vsel %vm2140_vm9, %v2136_v1, %v1586_v44  ;;  %v4890_v1 = vld [vmem:[#allocation42_spill] sm:$0xff] }
 0x32d   : > { %v2202_v17 = vsel %vm2173_vm10, %v2169_v9, %v1714_v50  ;;  %v4888_v50 = vld [vmem:[#allocation11_spill] sm:$0xff] }
 0x32f   : > { %v1588_v46 = vpop.permute.xlu1 %1587 }
 0x330   : > { %v1716_v63 = vpop.permute.xlu0 %1715  ;;  %v2170_v34 = vsel %vm2140_vm9, %v2137_v20, %v1588_v46  ;;  %v2076_v46 = vsel %vm2074_vm7, %v2043_v41, %v4888_v50 }
 0x331   : > { %v2203_v30 = vsel %vm2173_vm10, %v2170_v34, %v1716_v63 }
 0x333   : > { %v1334_v56 = vpop.permute.xlu1 %1333 }
 0x334   : > { %v4600_v58 = vpop.permute.xlu0 %1335 }
 0x337   : > { %v1842_v12 = vpop.permute.xlu1 %1841 }
 0x338   : > { %v1462_v32 = vpop.permute.xlu0 %1461  ;;  %v2235_v15 = vsel %vm2206_vm11, %v2202_v17, %v1842_v12  ;;  %v2072_v12 = vsel %vm2041_vm6, %v2039_v6, %v4890_v1 }
 0x339   : > { %v2105_v17 = vsel %vm2074_vm7, %v2072_v12, %v1334_v56 }
 0x33b   : > { %v1402_v33 = vpop.permute.xlu1 %1401 }
 0x33c   : > { %v1970_v53 = vpop.permute.xlu0 %1969  ;;  %v2108_v48 = vsel %vm2107_vm8, %v2075_v3, %v1402_v33 }
 0x33d   : > { %v2268_v13 = vsel %vm2239_vm12, %v2235_v15, %v1970_v53  ;;  %v2138_v53 = vsel %vm2107_vm8, %v2105_v17, %v1462_v32 }
 0x33e   : > { %3013 = vmatprep.mubr.msk.f32.mxu1 %vm2286_vm13, %v2268_v13 }
 0x33f   : > { %v1844_v52 = vpop.permute.xlu1 %1843 }
 0x340   : > { %v1464_v28 = vpop.permute.xlu0 %1463  ;;  %v2236_v27 = vsel %vm2206_vm11, %v2203_v30, %v1844_v52  ;;  %v2040_v52 = vsel %vm621_vm2, %v4357_v57, %v4269_v22 }
 0x343   : > { %v1404_v49 = vpop.permute.xlu1 %1403 }
 0x344   : > { %v1590_v61 = vpop.permute.xlu0 %1589  ;;  %v2109_v8 = vsel %vm2107_vm8, %v2076_v46, %v1404_v49  ;;  %v2073_v49 = vsel %vm2041_vm6, %v2040_v52, %v4293_v45 }
 0x345   : > { %v2171_v16 = vsel %vm2140_vm9, %v2138_v53, %v1590_v61  ;;  %v2106_v32 = vsel %vm2074_vm7, %v2073_v49, %v4600_v58 }
 0x346   : > { %v2139_v22 = vsel %vm2107_vm8, %v2106_v32, %v1464_v28 }
 0x347   : > { %v1530_v23 = vpop.permute.xlu1 %1529 }
 0x348   : > { %v1532_v55 = vpop.permute.xlu0 %1531  ;;  %v2141_v10 = vsel %vm2140_vm9, %v2108_v48, %v1530_v23 }
 0x349   : > { %v2142_v9 = vsel %vm2140_vm9, %v2109_v8, %v1532_v55 }
 0x34b   : > { %v1972_v35 = vpop.permute.xlu1 %1971 }
 0x34c   : > { %v2269_v0 = vsel %vm2239_vm12, %v2236_v27, %v1972_v35  ;;  %v1658_v47 = vpop.permute.xlu0 %1657 }
 0x34d   : > { %3014 = vmatmul.mubr.msk.f32.gmra.mrb[26].mxu1 %vm2286_vm13, %v2269_v0  ;;  %v2174_v36 = vsel %vm2173_vm10, %v2141_v10, %v1658_v47 }
 0x34f   : > { %v1592_v43 = vpop.permute.xlu1 %1591 }
 0x350   : > { %v1660_v26 = vpop.permute.xlu0 %1659  ;;  %v2172_v61 = vsel %vm2140_vm9, %v2139_v22, %v1592_v43 }
 0x351   : > { %v2175_v33 = vsel %vm2173_vm10, %v2142_v9, %v1660_v26 }
 0x353   : > { %v1718_v11 = vpop.permute.xlu1 %1717 }
 0x354   : > { %v1786_v51 = vpop.permute.xlu0 %1785  ;;  %v2204_v56 = vsel %vm2173_vm10, %v2171_v16, %v1718_v11 }
 0x355   : > { %v2207_v63 = vsel %vm2206_vm11, %v2174_v36, %v1786_v51 }
 0x357   : > { %v1720_v31 = vpop.permute.xlu1 %1719 }
 0x358   : > { %v1788_v21 = vpop.permute.xlu0 %1787  ;;  %v2205_v45 = vsel %vm2173_vm10, %v2172_v61, %v1720_v31 }
 0x359   : > { %v2208_v19 = vsel %vm2206_vm11, %v2175_v33, %v1788_v21 }
 0x35b   : > { %v1846_v44 = vpop.permute.xlu1 %1845 }
 0x35c   : > { %v1914_v59 = vpop.permute.xlu0 %1913  ;;  %v2237_v42 = vsel %vm2206_vm11, %v2204_v56, %v1846_v44 }
 0x35d   : > { %v2240_v24 = vsel %vm2239_vm12, %v2207_v63, %v1914_v59 }
 0x35e   : > { %2971 = vmatprep.mubr.msk.f32.mxu0 %vm2286_vm13, %v2240_v24 }
 0x35f   : > { %v1848_v15 = vpop.permute.xlu1 %1847 }
 0x360   : > { %v1916_v13 = vpop.permute.xlu0 %1915  ;;  %v2238_v4 = vsel %vm2206_vm11, %v2205_v45, %v1848_v15 }
 0x361   : > { %v2241_v14 = vsel %vm2239_vm12, %v2208_v19, %v1916_v13 }
 0x362   : > { %2972 = vmatmul.mubr.msk.f32.vlgmr.msra.gmra.mrb[32].mxu0 %vm2286_vm13, %v2241_v14 }
 0x363   : > { %v1974_v29 = vpop.permute.xlu1 %1973 }
 0x364   : > { %v2270_v57 = vsel %vm2239_vm12, %v2237_v42, %v1974_v29 }
 0x365   : > { %3016 = vmatprep.mubr.msk.f32.mxu1 %vm2286_vm13, %v2270_v57 }
 0x367   : > { %v1976_v20 = vpop.permute.xlu1 %1975 }
 0x368   : > { %v2271_v58 = vsel %vm2239_vm12, %v2238_v4, %v1976_v20  ;;  %v2991_v34 = vpop.f32.mrb[10].mxu1  ;;  %v3090_v20 = vld [vmem:[%s4795_s4] ss:$0 sm:$0xff] }
 0x369   : > { %v2519_v23 = vadd.f32 %v2991_v34, %v4254_v39  ;;  %v2513_v28 = vpop.f32.mrb[11].mxu1  ;;  %3017 = vmatmul.mubr.msk.f32.gmra.mrb[28].mxu1 %vm2286_vm13, %v2271_v58 }
 0x36a   : > { %v2514_v55 = vadd.f32 %v4254_v39, %v2513_v28 }
 0x36b   : > { %v2625_v30 = vmax.f32 %v2519_v23, 0.0 }
 0x36c   : > { %v2624_v27 = vmax.f32 %v2514_v55, 0.0 }
 0x36d   : > { %2658 = vst.msk [vmem:[%s4289_s30 + $0x68] sm:$0xff] %vm2644_vm14, %v2625_v30 }
 0x36e   : > { %2657 = vst.msk [vmem:[%s4289_s30 + $0x60] sm:$0xff] %vm2644_vm14, %v2624_v27 }
 0x37c   : > { %v2994_v35 = vpop.f32.mrb[12].mxu1 }
 0x37d   : > { %v2529_v0 = vadd.f32 %v2994_v35, %v4254_v39  ;;  %v2523_v47 = vpop.f32.mrb[13].mxu1 }
 0x37e   : > { %v2524_v43 = vadd.f32 %v4254_v39, %v2523_v47 }
 0x37f   : > { %v2627_v26 = vmax.f32 %v2529_v0, 0.0 }
 0x380   : > { %v2626_v40 = vmax.f32 %v2524_v43, 0.0 }
 0x381   : > { %2660 = vst.msk [vmem:[%s4289_s30 + $0x78] sm:$0xff] %vm2644_vm14, %v2627_v26 }
 0x382   : > { %2659 = vst.msk [vmem:[%s4289_s30 + $0x70] sm:$0xff] %vm2644_vm14, %v2626_v40 }
 0x390   : > { %v2997_v11 = vpop.f32.mrb[14].mxu1 }
 0x391   : > { %v2539_v38 = vadd.f32 %v2997_v11, %v4254_v39  ;;  %v2533_v25 = vpop.f32.mrb[15].mxu1 }
 0x392   : > { %v2534_v51 = vadd.f32 %v4254_v39, %v2533_v25 }
 0x393   : > { %v2629_v2 = vmax.f32 %v2539_v38, 0.0 }
 0x394   : > { %v2628_v7 = vmax.f32 %v2534_v51, 0.0 }
 0x395   : > { %2662 = vst.msk [vmem:[%s4289_s30 + $0x88] sm:$0xff] %vm2644_vm14, %v2629_v2 }
 0x396   : > { %2661 = vst.msk [vmem:[%s4289_s30 + $0x80] sm:$0xff] %vm2644_vm14, %v2628_v7 }
 0x3a4   : > { %v3000_v62 = vpop.f32.mrb[16].mxu1 }
 0x3a5   : > { %v2549_v31 = vadd.f32 %v3000_v62, %v4254_v39  ;;  %v2543_v60 = vpop.f32.mrb[17].mxu1 }
 0x3a6   : > { %v2544_v37 = vadd.f32 %v4254_v39, %v2543_v60 }
 0x3a7   : > { %v2631_v18 = vmax.f32 %v2549_v31, 0.0 }
 0x3a8   : > { %v2630_v3 = vmax.f32 %v2544_v37, 0.0 }
 0x3a9   : > { %2664 = vst.msk [vmem:[%s4289_s30 + $0x98] sm:$0xff] %vm2644_vm14, %v2631_v18 }
 0x3aa   : > { %2663 = vst.msk [vmem:[%s4289_s30 + $0x90] sm:$0xff] %vm2644_vm14, %v2630_v3 }
 0x3b5   : > { %v3003_v21 = vpop.f32.mrb[18].mxu1 }
 0x3b6   : > { %v2559_v48 = vadd.f32 %v3003_v21, %v4254_v39  ;;  %v2553_v10 = vpop.f32.mrb[19].mxu1 }
 0x3b7   : > { %v2554_v5 = vadd.f32 %v4254_v39, %v2553_v10 }
 0x3b8   : > { %v2633_v41 = vmax.f32 %v2559_v48, 0.0 }
 0x3b9   : > { %v2632_v36 = vmax.f32 %v2554_v5, 0.0 }
 0x3ba   : > { %2666 = vst.msk [vmem:[%s4289_s30 + $0xa8] sm:$0xff] %vm2644_vm14, %v2633_v41 }
 0x3bb   : > { %2665 = vst.msk [vmem:[%s4289_s30 + $0xa0] sm:$0xff] %vm2644_vm14, %v2632_v36 }
 0x3cd   : > { %v3006_v44 = vpop.f32.mrb[20].mxu1 }
 0x3ce   : > { %v2569_v50 = vadd.f32 %v3006_v44, %v4254_v39  ;;  %v2563_v46 = vpop.f32.mrb[21].mxu1 }
 0x3cf   : > { %v2564_v63 = vadd.f32 %v4254_v39, %v2563_v46 }
 0x3d0   : > { %v2635_v59 = vmax.f32 %v2569_v50, 0.0 }
 0x3d1   : > { %v2634_v54 = vmax.f32 %v2564_v63, 0.0 }
 0x3d2   : > { %2668 = vst.msk [vmem:[%s4289_s30 + $0xb8] sm:$0xff] %vm2644_vm14, %v2635_v59 }
 0x3d3   : > { %2667 = vst.msk [vmem:[%s4289_s30 + $0xb0] sm:$0xff] %vm2644_vm14, %v2634_v54 }
 0x3e5   : > { %v3009_v6 = vpop.f32.mrb[22].mxu1 }
 0x3e6   : > { %v2579_v8 = vadd.f32 %v3009_v6, %v4254_v39  ;;  %v2573_v24 = vpop.f32.mrb[23].mxu1 }
 0x3e7   : > { %v2574_v1 = vadd.f32 %v4254_v39, %v2573_v24 }
 0x3e8   : > { %v2637_v12 = vmax.f32 %v2579_v8, 0.0 }
 0x3e9   : > { %v2636_v9 = vmax.f32 %v2574_v1, 0.0 }
 0x3ea   : > { %2670 = vst.msk [vmem:[%s4289_s30 + $0xc8] sm:$0xff] %vm2644_vm14, %v2637_v12 }
 0x3eb   : > { %2669 = vst.msk [vmem:[%s4289_s30 + $0xc0] sm:$0xff] %vm2644_vm14, %v2636_v9 }
 0x3fd   : > { %v3012_v17 = vpop.f32.mrb[24].mxu1 }
 0x3fe   : > { %v2589_v33 = vadd.f32 %v3012_v17, %v4254_v39  ;;  %v2583_v15 = vpop.f32.mrb[25].mxu1 }
 0x3ff   : > { %v2584_v53 = vadd.f32 %v4254_v39, %v2583_v15 }
 0x400   : > { %v2639_v19 = vmax.f32 %v2589_v33, 0.0 }
 0x401   : > { %v2638_v13 = vmax.f32 %v2584_v53, 0.0 }
 0x402   : > { %2672 = vst.msk [vmem:[%s4289_s30 + $0xd8] sm:$0xff] %vm2644_vm14, %v2639_v19 }
 0x403   : > { %2671 = vst.msk [vmem:[%s4289_s30 + $0xd0] sm:$0xff] %vm2644_vm14, %v2638_v13 }
 0x420   : > { %v3015_v52 = vpop.f32.mrb[26].mxu1 }
 0x421   : > { %v2599_v16 = vadd.f32 %v3015_v52, %v4254_v39  ;;  %v2593_v14 = vpop.f32.mrb[27].mxu1 }
 0x422   : > { %v2594_v49 = vadd.f32 %v4254_v39, %v2593_v14 }
 0x423   : > { %v2641_v56 = vmax.f32 %v2599_v16, 0.0 }
 0x424   : > { %v2640_v32 = vmax.f32 %v2594_v49, 0.0 }
 0x425   : > { %2674 = vst.msk [vmem:[%s4289_s30 + $0xe8] sm:$0xff] %vm2644_vm14, %v2641_v56 }
 0x426   : > { %2673 = vst.msk [vmem:[%s4289_s30 + $0xe0] sm:$0xff] %vm2644_vm14, %v2640_v32 }
 0x435   : > { %v2973_v42 = vpop.f32.mrb[32].mxu0 }
 0x436   : > { %v2459_v29 = vadd.f32 %v2973_v42, %v4254_v39  ;;  %v2453_v22 = vpop.f32.mrb[33].mxu0 }
 0x437   : > { %v2454_v57 = vadd.f32 %v4254_v39, %v2453_v22 }
 0x438   : > { %v2613_v61 = vmax.f32 %v2459_v29, 0.0 }
 0x439   : > { %v2612_v45 = vmax.f32 %v2454_v57, 0.0 }
 0x43a   : > { %2646 = vst.msk [vmem:[%s4289_s30 + $0x8] sm:$0xff] %vm2644_vm14, %v2613_v61 }
 0x43b   : > { %2645 = vst.msk [vmem:[%s4289_s30] sm:$0xff] %vm2644_vm14, %v2612_v45 }
 0x43c   : > { %v3018_v4 = vpop.f32.mrb[28].mxu1 }
 0x43d   : > { %v2609_v58 = vadd.f32 %v3090_v20, %v3018_v4  ;;  %v2603_v34 = vpop.f32.mrb[29].mxu1 }
 0x43e   : > { %v2604_v39 = vadd.f32 %v3090_v20, %v2603_v34 }
 0x43f   : > { %v2643_v23 = vmax.f32 %v2609_v58, 0.0 }
 0x440   : > { %v2642_v28 = vmax.f32 %v2604_v39, 0.0 }
 0x441   : > { %2676 = vst.msk [vmem:[%s4289_s30 + $0xf8] sm:$0xff] %vm2644_vm14, %v2643_v23 }
 0x442   : > { %2675 = vst.msk [vmem:[%s4289_s30 + $0xf0] sm:$0xff] %vm2644_vm14, %v2642_v28 }
 0x443   : > { %3104 = shalt.err (!%p3101_p3)
}
 0x444   : > { %s3105_s13 = scalar_lea.hbm %s4740_s7, 4096  ;;  %s3109_s26 = scalar_lea.hbm %s4796_s5, 8192 }
 0x445   : > { %p3106_p4 = scmp.ne.s32.totalorder %s4740_s7, %s3105_s13  ;;  %p3110_p9 = scmp.lt.u32.totalorder %s4740_s7, %s4796_s5 }
 0x446   : > { %p3111_p10 = scmp.lt.u32.totalorder %s3109_s26, %s3105_s13  ;;  %p3113_p12 = scmp.lt.u32.totalorder %s3105_s13, %s4740_s7 }
 0x447   : > { %p3107_p7 = pnand %p3106_p4, %p3235_p5 }
 0x448   : > { %p3112_p11 = por %p3111_p10, %p3110_p9 }
 0x449   : > { %p3108_p8 = pneg %p3107_p7 }
 0x44a   : > { %p3114_p13 = por %p3113_p12, %p3112_p11 }
 0x44c   : > { %p3115_p0 = pnand %p3114_p13, %p3108_p8 }
 0x44e   : > { %3118 = shalt.err (!%p3115_p0)
}
 0x44f   : > { %s3165_s23 = smov 128   ;;  %s3166_s14 = smov 8  }
 0x450   : > { %3039 = dma.vmem_to_hbm [thread:$0]  (%p3235_p5), %s4742_s17, 4096, %s4740_s7, %s4750_s22, %s3165_s23, %s3165_s23, %s3166_s14  }
 0x451 PF: > { %p3045_p1 = scmp.ge.s32.totalorder %s3153_s21, 2  ;;  %s2706_s15 = sand.u32 1, %s3141_s18  }
 0x452   : > { %s2707_s6 = scalar_lea.sflag [#allocation4], %s2706_s15 }
 0x453   : > { %p3042_p2 = pnand %p3045_p1, %p3239_p6 }
 0x455   : > { %3136 = dma.done.wait (!%p3042_p2), %s2707_s6, 4096  }
 0x456   : > { %3138 = vsyncadd (!%p3042_p2), %s2707_s6, 4294963200  ;;  %p15_p3 = scmp.ge.s32.totalorder %s3222_s24, 4   ;;  %s4891_s18 = smov %s3145_s19 }
 0x457   : > { %s4892_s19 = smov %s3149_s20  ;;  %s4893_s20 = smov %s3233_s27 }
 0x458   : > { %s4894_s21 = smov %s3222_s24  ;;  %17 = sbr.rel (!%p15_p3) target bundleno = 3 (0x3), region = 78 }
 0x45f   :  { %2712 = vsyncpa [#allocation4], 1 }
 0x460   :  { %2714 = vsyncpa [#allocation4 + $0x1], 1 }

</bundles_post_ra>
